<compile_context>
chip_gen: v5e
topology: v5e:2x2
jax: 0.10.0
libtpu: 0.0.40
codegen_flags: <defaults>
</compile_context>

<pallas_src>
import functools

import jax
import jax.numpy as jnp
from jax.experimental import pallas as pl
from jax.experimental.pallas import tpu as pltpu

HIDDEN = 1024  # fixed by the PyTorch module (fc1 = Linear(att_size, 1024))


def _round_up(x, m):
    return (x + m - 1) // m * m


def _device_kind():
    try:
        return jax.devices()[0].device_kind.lower()
    except Exception:  # pragma: no cover - CPU / interpret fallback
        return ""


def _disc_kernel(att_ref, w1_ref, b1_ref, w2_ref, b2_ref, out_ref, h_ref):
    # Grid is (batch_tiles, feature_tiles).  The feature axis j MUST remain the
    # innermost, sequentially iterated ("arbitrary") grid axis: the fc1
    # activations h_ref are computed once per batch tile at j == 0 and reused by
    # every subsequent feature step of that batch tile.  Only the batch axis may
    # be split across cores (each core gets its own scratch).
    j = pl.program_id(1)

    @pl.when(j == 0)
    def _():
        h = jnp.dot(att_ref[...], w1_ref[...], preferred_element_type=jnp.float32)
        h = jnp.maximum(h + b1_ref[...], 0.0)        # bias + ReLU in f32
        h_ref[...] = h.astype(h_ref.dtype)           # stored at fc2 operand precision

    # fc2 + ReLU on the current feature tile.
    o = jnp.dot(h_ref[...], w2_ref[...], preferred_element_type=jnp.float32)
    o = jnp.maximum(o + b2_ref[...], 0.0)            # bias + ReLU in f32
    out_ref[...] = o.astype(out_ref.dtype)


def discriminator_forward(att, w1, b1, w2, b2, *, tile_b=None, tile_n=None,
                          out_dtype=jnp.bfloat16):
    """att: (B, att_size); w1: (K_pad, 1024) pre-padded at init (K_pad >= att_size,
    padded rows are zero); b1: (1024,); w2: (1024, feature_size); b2: (feature_size,).
    Returns (B, feature_size) in `out_dtype` (bf16 by default)."""
    B, att_size = att.shape
    k1, hidden = w1.shape
    k2, feature_size = w2.shape
    assert k2 == hidden and k1 >= att_size

    kind = _device_kind()
    compute_dtype = w1.dtype

    # Cast att to the (bf16) compute dtype in the wrapper: halves att HBM traffic
    # into the kernel and removes the in-kernel astype.
    att = att.astype(compute_dtype)

    # fc1 contraction dim: W1 should already be padded to a multiple of 128 at
    # init; only pad here as a fallback (costs an extra HBM round trip).
    k_pad = _round_up(k1, 128)
    if k_pad != k1:
        w1 = jnp.pad(w1, ((0, k_pad - k1), (0, 0)))
    if k_pad != att_size:
        att = jnp.pad(att, ((0, 0), (0, k_pad - att_size)))

    # ---- batch tiling --------------------------------------------------------
    # Default: ONE batch tile (grid (1, nj)) so fc1 runs once and W2 is streamed
    # from HBM once.  On v7x (2 TensorCores/chip) keep 2 batch tiles when B is
    # large enough so the "parallel" batch axis shards across both cores.
    if tile_b is None:
        if ("v7" in kind) and B >= 256:
            b_pad = _round_up(B, 16)
            tile_b = b_pad // 2
        else:
            tile_b = min(_round_up(B, 8), 512)       # cap bounds VMEM for huge B
            b_pad = _round_up(B, tile_b)
    else:
        tile_b = _round_up(tile_b, 8)
        b_pad = _round_up(B, tile_b)
    if b_pad != B:
        att = jnp.pad(att, ((0, b_pad - B), (0, 0)))

    # ---- feature (output-N) tiling: lane-dense (multiple of 128) -------------
    if tile_n is None:
        # v5e (slower HBM, 197 TF/s): smaller tiles -> more feature steps ->
        # deeper overlap of the W2 stream with compute.
        candidates = (256, 128) if "v5" in kind else (512, 256, 128)
        tile_n = feature_size
        for cand in candidates:
            if feature_size % cand == 0:
                tile_n = cand
                break
    assert feature_size % tile_n == 0

    b1_2d = b1.reshape(1, hidden).astype(jnp.float32)
    b2_2d = b2.reshape(1, feature_size).astype(jnp.float32)

    h_dtype = w2.dtype                               # fc2 operand precision (bf16)
    grid = (b_pad // tile_b, feature_size // tile_n)

    def _isz(dt):
        return jnp.dtype(dt).itemsize

    # VMEM footprint: double-buffered streaming blocks, single-buffered constant
    # blocks (W1 / b1), resident h scratch.  Clamp to a v7x-safe (64 MiB phys)
    # range.
    vmem_bytes = (
        2 * tile_b * k_pad * _isz(compute_dtype)     # att tile (2 buffers)
        + 1 * k_pad * hidden * _isz(w1.dtype)        # W1 (Buffered(1))
        + 1 * hidden * 4                             # b1 (Buffered(1))
        + 2 * hidden * tile_n * _isz(w2.dtype)       # W2 tile (2 buffers)
        + 2 * tile_n * 4                             # b2 tile (2 buffers)
        + 2 * tile_b * tile_n * _isz(out_dtype)      # out tile (2 buffers)
        + tile_b * hidden * _isz(h_dtype)            # h scratch
    )
    vmem_limit = int(min(48 << 20, max(16 << 20, int(1.5 * vmem_bytes))))

    # Advisory cost for XLA: W2/b2 are re-read once per *batch* tile.
    flops = 2 * b_pad * (k_pad * hidden + hidden * feature_size)
    bytes_accessed = int(
        b_pad * k_pad * _isz(compute_dtype)
        + k_pad * hidden * _isz(w1.dtype) + hidden * 4
        + grid[0] * (hidden * feature_size * _isz(w2.dtype) + feature_size * 4)
        + b_pad * feature_size * _isz(out_dtype))

    out = pl.pallas_call(
        _disc_kernel,
        out_shape=jax.ShapeDtypeStruct((b_pad, feature_size), out_dtype),
        grid_spec=pltpu.PrefetchScalarGridSpec(
            num_scalar_prefetch=0,
            grid=grid,
            in_specs=[
                pl.BlockSpec((tile_b, k_pad), lambda i, j: (i, 0)),      # att tile
                pl.BlockSpec((k_pad, hidden), lambda i, j: (0, 0),       # W1 (const)
                             pipeline_mode=pl.Buffered(1)),
                pl.BlockSpec((1, hidden), lambda i, j: (0, 0),           # b1 (const)
                             pipeline_mode=pl.Buffered(1)),
                pl.BlockSpec((hidden, tile_n), lambda i, j: (0, j)),     # W2 tile
                pl.BlockSpec((1, tile_n), lambda i, j: (0, j)),          # b2 tile
            ],
            out_specs=pl.BlockSpec((tile_b, tile_n), lambda i, j: (i, j)),
            scratch_shapes=[pltpu.VMEM((tile_b, hidden), h_dtype)],      # fc1 acts
        ),
        compiler_params=pltpu.CompilerParams(
            dimension_semantics=("parallel", "arbitrary"),
            vmem_limit_bytes=vmem_limit,
        ),
        cost_estimate=pl.CostEstimate(
            flops=flops, transcendentals=0, bytes_accessed=bytes_accessed),
    )(att, w1, b1_2d, w2, b2_2d)

    if b_pad != B:
        out = out[:B]
    return out


def init_discriminator_params(key, feature_size=2048, att_size=85,
                              weight_dtype=jnp.bfloat16):
    """Matches the PyTorch module init: xavier_normal_ weights, zero biases.
    Weights are (in, out).  W1's input dim is zero-padded ONCE here to a
    multiple of 128 so the forward wrapper never has to re-pad it per call."""
    k1, k2 = jax.random.split(key)
    hidden = HIDDEN
    std1 = (2.0 / (att_size + hidden)) ** 0.5
    std2 = (2.0 / (hidden + feature_size)) ** 0.5
    w1 = jax.random.normal(k1, (att_size, hidden)) * std1
    w2 = (jax.random.normal(k2, (hidden, feature_size)) * std2).astype(weight_dtype)
    k_pad = _round_up(att_size, 128)
    w1 = jnp.pad(w1, ((0, k_pad - att_size), (0, 0))).astype(weight_dtype)
    b1 = jnp.zeros((hidden,), jnp.float32)
    b2 = jnp.zeros((feature_size,), jnp.float32)
    return w1, b1, w2, b2


if __name__ == "__main__":
    key = jax.random.PRNGKey(0)
    k_att, k_params = jax.random.split(key)

    # Small shapes consistent with the module (hidden=1024 is fixed by fc1).
    B, att_size, feature_size = 16, 85, 512
    att = jax.random.normal(k_att, (B, att_size), dtype=jnp.float32)
    w1, b1, w2, b2 = init_discriminator_params(
        k_params, feature_size=feature_size, att_size=att_size,
        weight_dtype=jnp.bfloat16)

    # tile_n=256 -> grid (1, 2): single batch tile (fc1 once, W2 streamed once),
    # two lane-dense feature tiles exercising the h-scratch reuse path.
    fwd = jax.jit(functools.partial(discriminator_forward, tile_n=256))
    out = jax.block_until_ready(fwd(att, w1, b1, w2, b2))

    # Pure-JAX reference with identical dtype handling (bf16 operands, f32 accum,
    # bf16 intermediate h, bf16 output).
    att_bf = att.astype(jnp.bfloat16)
    h = jnp.dot(att_bf, w1[:att_size], preferred_element_type=jnp.float32)
    h = jnp.maximum(h + b1, 0.0).astype(jnp.bfloat16)
    ref = jnp.dot(h, w2, preferred_element_type=jnp.float32)
    ref = jnp.maximum(ref + b2, 0.0)

    assert out.shape == (B, feature_size)
    assert out.dtype == jnp.bfloat16
    err = float(jnp.max(jnp.abs(out.astype(jnp.float32) - ref)))
    assert jnp.allclose(out.astype(jnp.float32), ref, atol=2e-2, rtol=2e-2), err

    print("KERNEL_OK")
</pallas_src>

<mosaic_0001>
module attributes {stable_mosaic.version = 11 : i64} {
  func.func @_disc_kernel(%arg0: i32, %arg1: i32, %arg2: memref<16x128xbf16, #tpu.memory_space<vmem>>, %arg3: memref<128x1024xbf16, #tpu.memory_space<vmem>>, %arg4: memref<1x1024xf32, #tpu.memory_space<vmem>>, %arg5: memref<1024x256xbf16, #tpu.memory_space<vmem>>, %arg6: memref<1x256xf32, #tpu.memory_space<vmem>>, %arg7: memref<16x256xbf16, #tpu.memory_space<vmem>>, %arg8: memref<16x1024xbf16, #tpu.memory_space<vmem>>) attributes {dimension_semantics = [#tpu.dimension_semantics<parallel>, #tpu.dimension_semantics<arbitrary>], iteration_bounds = array<i64: 1, 2>, scalar_prefetch = 0 : i64, scratch_operands = 1 : i64, tpu.core_type = #tpu.core_type<tc>, window_params = [{transform_indices = @transform_0, window_bounds = array<i64: 16, 128>}, {pipeline_mode = #tpu.pipeline_mode<synchronous>, transform_indices = @transform_1, window_bounds = array<i64: 128, 1024>}, {pipeline_mode = #tpu.pipeline_mode<synchronous>, transform_indices = @transform_2, window_bounds = array<i64: 1, 1024>}, {transform_indices = @transform_3, window_bounds = array<i64: 1024, 256>}, {transform_indices = @transform_4, window_bounds = array<i64: 1, 256>}, {transform_indices = @transform_5, window_bounds = array<i64: 16, 256>}]} {
    %c0_i32 = arith.constant 0 : i32
    %0 = arith.cmpi eq, %arg1, %c0_i32 : i32
    %1 = arith.extui %0 : i1 to i32
    %c0_i32_0 = arith.constant 0 : i32
    %2 = arith.cmpi ne, %1, %c0_i32_0 : i32
    scf.if %2 {
      %c0_9 = arith.constant 0 : index
      %c0_10 = arith.constant 0 : index
      %13 = vector.load %arg2[%c0_9, %c0_10] : memref<16x128xbf16, #tpu.memory_space<vmem>>, vector<16x128xbf16>
      %c0_11 = arith.constant 0 : index
      %c0_12 = arith.constant 0 : index
      %14 = vector.load %arg3[%c0_11, %c0_12] : memref<128x1024xbf16, #tpu.memory_space<vmem>>, vector<128x1024xbf16>
      %cst_13 = arith.constant dense<0.000000e+00> : vector<16x1024xf32>
      %15 = tpu.matmul %13, %14, %cst_13 {dimension_numbers = #tpu.dot_dimension_numbers<[1], [0], [0], [1], [0, 0, 1, 1], [], []>} : vector<16x128xbf16>, vector<128x1024xbf16>, vector<16x1024xf32> -> vector<16x1024xf32>
      %c0_14 = arith.constant 0 : index
      %c0_15 = arith.constant 0 : index
      %16 = vector.load %arg4[%c0_14, %c0_15] : memref<1x1024xf32, #tpu.memory_space<vmem>>, vector<1x1024xf32>
      %17 = vector.broadcast %16 : vector<1x1024xf32> to vector<16x1024xf32>
      %18 = arith.addf %15, %17 : vector<16x1024xf32>
      %cst_16 = arith.constant 0.000000e+00 : f32
      %19 = vector.broadcast %cst_16 : f32 to vector<16x1024xf32>
      %20 = arith.maximumf %18, %19 : vector<16x1024xf32>
      %21 = arith.truncf %20 : vector<16x1024xf32> to vector<16x1024xbf16>
      %c0_17 = arith.constant 0 : index
      %c0_18 = arith.constant 0 : index
      %22 = vector.load %arg8[%c0_17, %c0_18] : memref<16x1024xbf16, #tpu.memory_space<vmem>>, vector<16x1024xbf16>
      tpu.vector_store %arg8[%c0_17, %c0_18], %21 {strides = array<i32>} : memref<16x1024xbf16, #tpu.memory_space<vmem>>, vector<16x1024xbf16>,
    } else {
    }
    %c0 = arith.constant 0 : index
    %c0_1 = arith.constant 0 : index
    %3 = vector.load %arg8[%c0, %c0_1] : memref<16x1024xbf16, #tpu.memory_space<vmem>>, vector<16x1024xbf16>
    %c0_2 = arith.constant 0 : index
    %c0_3 = arith.constant 0 : index
    %4 = vector.load %arg5[%c0_2, %c0_3] : memref<1024x256xbf16, #tpu.memory_space<vmem>>, vector<1024x256xbf16>
    %cst = arith.constant dense<0.000000e+00> : vector<16x256xf32>
    %5 = tpu.matmul %3, %4, %cst {dimension_numbers = #tpu.dot_dimension_numbers<[1], [0], [0], [1], [0, 0, 1, 1], [], []>} : vector<16x1024xbf16>, vector<1024x256xbf16>, vector<16x256xf32> -> vector<16x256xf32>
    %c0_4 = arith.constant 0 : index
    %c0_5 = arith.constant 0 : index
    %6 = vector.load %arg6[%c0_4, %c0_5] : memref<1x256xf32, #tpu.memory_space<vmem>>, vector<1x256xf32>
    %7 = vector.broadcast %6 : vector<1x256xf32> to vector<16x256xf32>
    %8 = arith.addf %5, %7 : vector<16x256xf32>
    %cst_6 = arith.constant 0.000000e+00 : f32
    %9 = vector.broadcast %cst_6 : f32 to vector<16x256xf32>
    %10 = arith.maximumf %8, %9 : vector<16x256xf32>
    %11 = arith.truncf %10 : vector<16x256xf32> to vector<16x256xbf16>
    %c0_7 = arith.constant 0 : index
    %c0_8 = arith.constant 0 : index
    %12 = vector.load %arg7[%c0_7, %c0_8] : memref<16x256xbf16, #tpu.memory_space<vmem>>, vector<16x256xbf16>
    tpu.vector_store %arg7[%c0_7, %c0_8], %11 {strides = array<i32>} : memref<16x256xbf16, #tpu.memory_space<vmem>>, vector<16x256xbf16>,
    return
  }
  func.func @transform_0(%arg0: i32, %arg1: i32) -> (i32, i32) {
    %c0_i32 = arith.constant 0 : i32
    %c0_i32_0 = arith.constant 0 : i32
    return %arg0, %c0_i32 : i32, i32
  }
  func.func @transform_1(%arg0: i32, %arg1: i32) -> (i32, i32) {
    %c0_i32 = arith.constant 0 : i32
    %c0_i32_0 = arith.constant 0 : i32
    %c0_i32_1 = arith.constant 0 : i32
    return %c0_i32, %c0_i32_0 : i32, i32
  }
  func.func @transform_2(%arg0: i32, %arg1: i32) -> (i32, i32) {
    %c0_i32 = arith.constant 0 : i32
    %c0_i32_0 = arith.constant 0 : i32
    %c0_i32_1 = arith.constant 0 : i32
    return %c0_i32, %c0_i32_0 : i32, i32
  }
  func.func @transform_3(%arg0: i32, %arg1: i32) -> (i32, i32) {
    %c0_i32 = arith.constant 0 : i32
    %c0_i32_0 = arith.constant 0 : i32
    return %c0_i32, %arg1 : i32, i32
  }
  func.func @transform_4(%arg0: i32, %arg1: i32) -> (i32, i32) {
    %c0_i32 = arith.constant 0 : i32
    %c0_i32_0 = arith.constant 0 : i32
    return %c0_i32, %arg1 : i32, i32
  }
  func.func @transform_5(%arg0: i32, %arg1: i32) -> (i32, i32) {
    %c0_i32 = arith.constant 0 : i32
    return %arg0, %arg1 : i32, i32
  }
}

</mosaic_0001>

<bundles_post_ra>
// kernel: discriminator_forward.1
= control target key start
LH: loop header
LB: loop body
LE: loop exit
PB: predicated region body
PF: predicated region fallthrough
CT: control target
= control target key end

     0   :  { %s3850_s0 = inlined_call_operand.vmem [shape: bf16[16,128], index: 0, kind: input, shape index: {}]   ;;  %s3851_s1 = inlined_call_operand.hbm [shape: bf16[128,1024], index: 1, kind: input, shape index: {}]   ;;  %s3852_s2 = inlined_call_operand.vmem [shape: f32[1,1024], index: 2, kind: input, shape index: {}]   ;;  %s3853_s3 = inlined_call_operand.hbm [shape: bf16[1024,512], index: 3, kind: input, shape index: {}]   ;;  %s3854_s4 = inlined_call_operand.vmem [shape: f32[1,512], index: 4, kind: input, shape index: {}]   ;;  %s3855_s5 = inlined_call_operand.hbm [shape: bf16[16,512], index: 5, kind: output, shape index: {}]  }
   0x1   :  { %3859 = sst [smem:[#allocation14_spill]] %s3851_s1 }
   0x2   :  { %10 = vsyncpa [#allocation4], 0 }
   0x3   :  { %11 = vsyncpa [#allocation7], 0 }
   0x4   :  { %13 = vsyncpa [#allocation7 + $0x1], 0 }
   0x5   :  { %14 = vsyncpa [#allocation5], 0 }
   0x6   :  { %16 = vsyncpa [#allocation5 + $0x1], 0  ;;  %s3366_s18 = smov 0   ;;  %s3368_s19 = smov 0  }
   0x7   :  { %s3370_s20 = smov 0   ;;  %s3372_s21 = smov 0  }
   0x8   :  { %s3374_s22 = smov 0   ;;  %s3376_s23 = smov 0  }
   0x9 LB: > { %3860 = sst [smem:[#allocation12_spill]] %s3325_s23  ;;  %s2071_s24 = sadd.s32 4294967295, %s3325_s23   ;;  %s3325_s23 = sphi %s3376_s23, %s22_s23   ;;  %s3321_s22 = sphi %s3374_s22, %s3876_s22   ;;  %s3317_s21 = sphi %s3372_s21, %s3875_s21   ;;  %s3313_s20 = sphi %s3370_s20, %s3874_s20   ;;  %s3309_s19 = sphi %s3368_s19, %s3873_s19   ;;  %s3305_s18 = sphi %s3366_s18, %s3872_s18  }
   0xa   : > { %s2072_s25 = sadd.s32 4294967294, %s3325_s23   ;;  %p122_p0 = scmp.ne.s32.totalorder %s3309_s19, %s3305_s18 }
   0xb   : > { %p3400_p1 = scmp.eq.s32.totalorder %s2071_s24, 0  ;;  %p3404_p2 = scmp.eq.s32.totalorder %s2071_s24, 1 }
   0xc   : > { %p180_p3 = scmp.eq.s32.totalorder %s2072_s25, 1  ;;  %p2073_p5 = scmp.ge.s32.totalorder %s3325_s23, 1 }
   0xd   : > { %p3410_p4 = por %p3400_p1, %p122_p0  ;;  %p187_p7 = scmp.lt.s32.totalorder %s3325_s23, 3 }
   0xe   : > { %p3415_p6 = por %p180_p3, %p122_p0  ;;  %s3865_s1 = sld [smem:[#allocation14_spill]] }
   0xf   : > { %p3423_p8 = pnand %p2073_p5, %p187_p7  ;;  %s3327_s9 = smov [#allocation3]  }
  0x10   : > { %s209_s10 = sshll.u32 %s3327_s9, 4  ;;  %p2076_p11 = scmp.ge.s32.totalorder %s3325_s23, 2  ;;  %s210_s10 = int_to_ptr.vmem [resolvable:$true] %s209_s10 }
  0x11   : > { %p3106_p9 = pneg %p3423_p8  ;;  %s3328_s11 = smov 512  }
  0x12   : > { %s3329_s12 = smov 32   ;;  %s31_s13 = sadd.s32 1, %s3321_s22 }
  0x13   : > { %p3107_p10 = pnand %p3106_p9, %p3400_p1  ;;  %p32_p12 = scmp.ge.s32.totalorder %s31_s13, 2 }
  0x14   : > { %s207_s7 = sshll.u32 %s3865_s1, 4  ;;  %s109_s14 = sadd.s32 1, %s3313_s20  ;;  %s208_s7 = int_to_ptr.hbm [resolvable:$true] %s207_s7 }
  0x15   : > { %3109 = dma.hbm_to_vmem [thread:$0]  (!%p3107_p10), %s208_s7, 8192, %s210_s10, [#allocation4], %s3328_s11, %s3328_s11, %s3329_s12  }
  0x16   : > { %p116_p13 = scmp.ne.s32.totalorder %s3313_s20, %s3309_s19  ;;  %p117_p0 = scmp.eq.s32.totalorder %s3325_s23, 0 }
  0x17   : > { %s3878_s13 = smov (%p32_p12, %s31_s13), 0  ;;  %p3119_p7 = scmp.lt.s32.totalorder %s3325_s23, 2 }
  0x18   : > { %3867 = sst [smem:[#allocation13_spill]] %s3878_s13  ;;  %p3439_p3 = por %p117_p0, %p116_p13 }
  0x19   : > { %p3445_p5 = por %p3404_p2, %p116_p13  ;;  %s106_s17 = ssub.s32 %s3321_s22, %s3878_s13 }
  0x1a   : > { %p107_p9 = scmp.eq.s32.totalorder %s106_s17, 0  ;;  %s226_s24 = sand.u32 1, %s3313_s20  }
  0x1b   : > { %s2077_s25 = sshll.u32 %s226_s24, 10  ;;  %s2895_s6 = sshll.u32 %s3321_s22, 3 }
  0x1c   : > { %s3454_s30 = scalar_select %p107_p9, %s3313_s20, %s109_s14  }
  0x1d   : > { %s235_s10 = scalar_lea.hbm %s3853_s3, %s2895_s6  ;;  %s230_s11 = scalar_lea.vmem [#allocation6], %s2077_s25 }
  0x1e   : > { %s238_s12 = sshll.u32 %s230_s11, 4  ;;  %s236_s27 = sshll.u32 %s235_s10, 4  ;;  %s239_s12 = int_to_ptr.vmem [resolvable:$true] %s238_s12  ;;  %s237_s27 = int_to_ptr.hbm [resolvable:$true] %s236_s27 }
  0x1f   : > { %p3111_p2 = pnand %p3119_p7, %p3439_p3  ;;  %s227_s1 = scalar_lea.sflag [#allocation7], %s226_s24 }
  0x20   : > { %s3330_s13 = smov 256   ;;  %s3331_s23 = smov 128  }
  0x21   : > { %s3332_s17 = smov 8   ;;  %258 = sbr.rel (%p3423_p8) target bundleno = 553 (0x229), region = 40 }
  0x22   : > { %3113 = dma.hbm_to_vmem [thread:$0]  (!%p3111_p2), %s237_s27, 16384, %s239_s12, %s227_s1, %s3330_s13, %s3331_s23, %s3332_s17  }
  0x26   : > { %3292 = dma.done.wait (%p3400_p1), [#allocation4], 8192  }
  0x27   : > { %3294 = vsyncadd (%p3400_p1), [#allocation4], 4294959104  ;;  %s3469_s14 = sand.u32 1, %s3309_s19  }
  0x28   : > { %s2082_s15 = sshll.u32 %s3469_s14, 10  ;;  %s266_s24 = scalar_lea.sflag [#allocation7], %s3469_s14 }
  0x29   : > { %s3473_s25 = scalar_lea.vmem [#allocation6], %s2082_s15 }
  0x2a   : > { %3296 = dma.done.wait (%p3410_p4), %s266_s24, 16384  }
  0x2b   : > { %3298 = vsyncadd (%p3410_p4), %s266_s24, 4294950912  ;;  %s2083_s1 = sshll.u32 %s3469_s14, 4  ;;  %s2084_s23 = sshll.u32 %s3317_s21, 1 }
  0x2c   : > { %p314_p1 = scmp.lt.s32.totalorder %s2084_s23, 3  ;;  %s3487_s6 = scalar_lea.vmem [#allocation8], %s2083_s1 }
  0x2d   : > { %p2085_p8 = scmp.ne.s32.totalorder %s3317_s21, 0 }
  0x2e   : > { %s3880_s23 = smov (!%p314_p1, %s2084_s23), 3 }
  0x2f   : > { %s316_s13 = scalar_lea.vmem %s3854_s4, %s3880_s23  ;;  %323 = sbr.rel (%p2085_p8) target bundleno = 268 (0x10c), region = 52 }
  0x34   : > { %v2316_v0 = vld [vmem:[#allocation3 + $0x1c0] sm:$0xf]  ;;  %v2953_v2 = vld [vmem:[#allocation3 + $0x1c4] sm:$0xf]  ;;  %v2324_v5 = vld [vmem:[#allocation3 + $0x1c8] sm:$0xf] }
  0x35   : > { %v2957_v1 = vld [vmem:[#allocation3 + $0x1dc] sm:$0xf0]  ;;  %v2318_v4 = vld [vmem:[#allocation3 + $0x1e0] sm:$0xf0]  ;;  %v2958_v6 = vld [vmem:[#allocation3 + $0x1e4] sm:$0xf0] }
  0x36   : > { %v2317_v3 = vor.u32 %v2957_v1, %v2316_v0  ;;  %v2321_v7 = vor.u32 %v2953_v2, %v2318_v4  ;;  %v2325_v8 = vor.u32 %v2958_v6, %v2324_v5  ;;  %v2954_v9 = vld [vmem:[#allocation3 + $0x1cc] sm:$0xf]  ;;  %v2284_v11 = vld [vmem:[#allocation3 + $0x180] sm:$0xf]  ;;  %v2945_v14 = vld [vmem:[#allocation3 + $0x184] sm:$0xf] }
  0x37   : > { %v2326_v10 = vld [vmem:[#allocation3 + $0x1e8] sm:$0xf0]  ;;  %v2949_v13 = vld [vmem:[#allocation3 + $0x19c] sm:$0xf0]  ;;  %v2286_v15 = vld [vmem:[#allocation3 + $0x1a0] sm:$0xf0] }
  0x38   : > { %734 = vmatpush.bf16.msra.mxu0 %v2317_v3  ;;  %v2329_v12 = vor.u32 %v2954_v9, %v2326_v10  ;;  %748 = vmatpush.bf16.msra.mxu1 %v2321_v7  ;;  %v2285_v16 = vor.u32 %v2949_v13, %v2284_v11  ;;  %v2289_v17 = vor.u32 %v2945_v14, %v2286_v15  ;;  %v2292_v18 = vld [vmem:[#allocation3 + $0x188] sm:$0xf]  ;;  %v2946_v20 = vld [vmem:[#allocation3 + $0x18c] sm:$0xf]  ;;  %v2252_v23 = vld [vmem:[#allocation3 + $0x140] sm:$0xf] }
  0x39   : > { %762 = vmatpush.bf16.msra.mxu2 %v2325_v8  ;;  %v2950_v19 = vld [vmem:[#allocation3 + $0x1a4] sm:$0xf0]  ;;  %v2294_v22 = vld [vmem:[#allocation3 + $0x1a8] sm:$0xf0]  ;;  %v2941_v24 = vld [vmem:[#allocation3 + $0x15c] sm:$0xf0] }
  0x3a   : > { %776 = vmatpush.bf16.msra.mxu3 %v2329_v12  ;;  %v2293_v21 = vor.u32 %v2950_v19, %v2292_v18  ;;  %v2297_v25 = vor.u32 %v2946_v20, %v2294_v22  ;;  %v2937_v26 = vld [vmem:[#allocation3 + $0x144] sm:$0xf]  ;;  %v2260_v28 = vld [vmem:[#allocation3 + $0x148] sm:$0xf]  ;;  %v2253_v29 = vor.u32 %v2941_v24, %v2252_v23  ;;  %v2938_v31 = vld [vmem:[#allocation3 + $0x14c] sm:$0xf] }
  0x3b   : > { %v2254_v27 = vld [vmem:[#allocation3 + $0x160] sm:$0xf0]  ;;  %v2942_v30 = vld [vmem:[#allocation3 + $0x164] sm:$0xf0]  ;;  %v2262_v32 = vld [vmem:[#allocation3 + $0x168] sm:$0xf0] }
  0x3c   : > { %735 = vmatpush.bf16.msra.mxu0 %v2285_v16  ;;  %749 = vmatpush.bf16.msra.mxu1 %v2289_v17  ;;  %v2257_v33 = vor.u32 %v2937_v26, %v2254_v27  ;;  %v2261_v34 = vor.u32 %v2942_v30, %v2260_v28  ;;  %v2220_v35 = vld [vmem:[#allocation3 + $0x100] sm:$0xf]  ;;  %v2929_v37 = vld [vmem:[#allocation3 + $0x104] sm:$0xf]  ;;  %v2265_v38 = vor.u32 %v2938_v31, %v2262_v32  ;;  %v2228_v40 = vld [vmem:[#allocation3 + $0x108] sm:$0xf] }
  0x3d   : > { %763 = vmatpush.bf16.msra.mxu2 %v2293_v21  ;;  %v2933_v36 = vld [vmem:[#allocation3 + $0x11c] sm:$0xf0]  ;;  %v2222_v39 = vld [vmem:[#allocation3 + $0x120] sm:$0xf0]  ;;  %v2934_v41 = vld [vmem:[#allocation3 + $0x124] sm:$0xf0] }
  0x3e   : > { %777 = vmatpush.bf16.msra.mxu3 %v2297_v25  ;;  %v2930_v42 = vld [vmem:[#allocation3 + $0x10c] sm:$0xf]  ;;  %v2221_v44 = vor.u32 %v2933_v36, %v2220_v35  ;;  %v2225_v45 = vor.u32 %v2929_v37, %v2222_v39  ;;  %v2229_v46 = vor.u32 %v2934_v41, %v2228_v40  ;;  %v2188_v47 = vld [vmem:[#allocation3 + $0xc0] sm:$0xf]  ;;  %v2921_v49 = vld [vmem:[#allocation3 + $0xc4] sm:$0xf] }
  0x3f   : > { %v2230_v43 = vld [vmem:[#allocation3 + $0x128] sm:$0xf0]  ;;  %v2925_v48 = vld [vmem:[#allocation3 + $0xdc] sm:$0xf0]  ;;  %v2190_v51 = vld [vmem:[#allocation3 + $0xe0] sm:$0xf0] }
  0x40   : > { %736 = vmatpush.bf16.msra.mxu0 %v2253_v29  ;;  %750 = vmatpush.bf16.msra.mxu1 %v2257_v33  ;;  %v2233_v50 = vor.u32 %v2930_v42, %v2230_v43  ;;  %v2196_v52 = vld [vmem:[#allocation3 + $0xc8] sm:$0xf]  ;;  %v2922_v54 = vld [vmem:[#allocation3 + $0xcc] sm:$0xf]  ;;  %v2189_v56 = vor.u32 %v2925_v48, %v2188_v47  ;;  %v2193_v57 = vor.u32 %v2921_v49, %v2190_v51  ;;  %v2156_v59 = vld [vmem:[#allocation3 + $0x80] sm:$0xf] }
  0x41   : > { %764 = vmatpush.bf16.msra.mxu2 %v2261_v34  ;;  %v2926_v53 = vld [vmem:[#allocation3 + $0xe4] sm:$0xf0]  ;;  %v2198_v55 = vld [vmem:[#allocation3 + $0xe8] sm:$0xf0]  ;;  %v2917_v60 = vld [vmem:[#allocation3 + $0x9c] sm:$0xf0] }
  0x42   : > { %778 = vmatpush.bf16.msra.mxu3 %v2265_v38  ;;  %v2197_v58 = vor.u32 %v2926_v53, %v2196_v52  ;;  %v2913_v61 = vld [vmem:[#allocation3 + $0x84] sm:$0xf]  ;;  %v2201_v62 = vor.u32 %v2922_v54, %v2198_v55  ;;  %v2164_v0 = vld [vmem:[#allocation3 + $0x88] sm:$0xf]  ;;  %v2914_v2 = vld [vmem:[#allocation3 + $0x8c] sm:$0xf]  ;;  %v2157_v4 = vor.u32 %v2917_v60, %v2156_v59 }
  0x43   : > { %v2158_v63 = vld [vmem:[#allocation3 + $0xa0] sm:$0xf0]  ;;  %v2918_v1 = vld [vmem:[#allocation3 + $0xa4] sm:$0xf0]  ;;  %v2166_v3 = vld [vmem:[#allocation3 + $0xa8] sm:$0xf0] }
  0x44   : > { %737 = vmatpush.bf16.msra.mxu0 %v2221_v44  ;;  %751 = vmatpush.bf16.msra.mxu1 %v2225_v45  ;;  %v2161_v5 = vor.u32 %v2913_v61, %v2158_v63  ;;  %v2165_v6 = vor.u32 %v2918_v1, %v2164_v0  ;;  %v2124_v7 = vld [vmem:[#allocation3 + $0x40] sm:$0xf]  ;;  %v2905_v9 = vld [vmem:[#allocation3 + $0x44] sm:$0xf]  ;;  %v2169_v10 = vor.u32 %v2914_v2, %v2166_v3  ;;  %v2132_v12 = vld [vmem:[#allocation3 + $0x48] sm:$0xf] }
  0x45   : > { %765 = vmatpush.bf16.msra.mxu2 %v2229_v46  ;;  %v2909_v8 = vld [vmem:[#allocation3 + $0x5c] sm:$0xf0]  ;;  %v2126_v11 = vld [vmem:[#allocation3 + $0x60] sm:$0xf0]  ;;  %v2910_v13 = vld [vmem:[#allocation3 + $0x64] sm:$0xf0] }
  0x46   : > { %779 = vmatpush.bf16.msra.mxu3 %v2233_v50  ;;  %v2906_v14 = vld [vmem:[#allocation3 + $0x4c] sm:$0xf]  ;;  %v2125_v16 = vor.u32 %v2909_v8, %v2124_v7  ;;  %v2092_v17 = vld [vmem:[#allocation3] sm:$0xf]  ;;  %v2129_v19 = vor.u32 %v2905_v9, %v2126_v11  ;;  %v2133_v20 = vor.u32 %v2910_v13, %v2132_v12  ;;  %v2897_v21 = vld [vmem:[#allocation3 + $0x4] sm:$0xf] }
  0x47   : > { %v2134_v15 = vld [vmem:[#allocation3 + $0x68] sm:$0xf0]  ;;  %v2901_v18 = vld [vmem:[#allocation3 + $0x1c] sm:$0xf0]  ;;  %v2094_v22 = vld [vmem:[#allocation3 + $0x20] sm:$0xf0] }
  0x48   : > { %738 = vmatpush.bf16.msra.mxu0 %v2189_v56  ;;  %752 = vmatpush.bf16.msra.mxu1 %v2193_v57  ;;  %v2100_v23 = vld [vmem:[#allocation3 + $0x8] sm:$0xf]  ;;  %v2137_v24 = vor.u32 %v2906_v14, %v2134_v15  ;;  %v2898_v26 = vld [vmem:[#allocation3 + $0xc] sm:$0xf]  ;;  %v2332_v28 = vld [vmem:[#allocation3 + $0x1d0] sm:$0xf]  ;;  %v2093_v31 = vor.u32 %v2901_v18, %v2092_v17  ;;  %v2097_v35 = vor.u32 %v2897_v21, %v2094_v22 }
  0x49   : > { %766 = vmatpush.bf16.msra.mxu2 %v2197_v58  ;;  %v2902_v25 = vld [vmem:[#allocation3 + $0x24] sm:$0xf0]  ;;  %v2102_v27 = vld [vmem:[#allocation3 + $0x28] sm:$0xf0]  ;;  %v2959_v29 = vld [vmem:[#allocation3 + $0x1ec] sm:$0xf0] }
  0x4a   : > { %780 = vmatpush.bf16.msra.mxu3 %v2201_v62  ;;  %v2955_v30 = vld [vmem:[#allocation3 + $0x1d4] sm:$0xf]  ;;  %v2340_v33 = vld [vmem:[#allocation3 + $0x1d8] sm:$0xf]  ;;  %v2101_v36 = vor.u32 %v2902_v25, %v2100_v23  ;;  %v2956_v37 = vld [vmem:[#allocation3 + $0x1dc] sm:$0xf]  ;;  %v2105_v39 = vor.u32 %v2898_v26, %v2102_v27  ;;  %v2333_v40 = vor.u32 %v2959_v29, %v2332_v28 }
  0x4b   : > { %v2334_v32 = vld [vmem:[#allocation3 + $0x1f0] sm:$0xf0]  ;;  %v2960_v34 = vld [vmem:[#allocation3 + $0x1f4] sm:$0xf0]  ;;  %v2342_v38 = vld [vmem:[#allocation3 + $0x1f8] sm:$0xf0] }
  0x4c   : > { %739 = vmatpush.bf16.msra.mxu0 %v2157_v4  ;;  %753 = vmatpush.bf16.msra.mxu1 %v2161_v5  ;;  %v2300_v41 = vld [vmem:[#allocation3 + $0x190] sm:$0xf]  ;;  %v2337_v42 = vor.u32 %v2955_v30, %v2334_v32  ;;  %v2341_v43 = vor.u32 %v2960_v34, %v2340_v33  ;;  %v2947_v45 = vld [vmem:[#allocation3 + $0x194] sm:$0xf]  ;;  %v2345_v47 = vor.u32 %v2956_v37, %v2342_v38  ;;  %v2308_v48 = vld [vmem:[#allocation3 + $0x198] sm:$0xf] }
  0x4d   : > { %767 = vmatpush.bf16.msra.mxu2 %v2165_v6  ;;  %v2951_v44 = vld [vmem:[#allocation3 + $0x1ac] sm:$0xf0]  ;;  %v2302_v46 = vld [vmem:[#allocation3 + $0x1b0] sm:$0xf0]  ;;  %v2952_v49 = vld [vmem:[#allocation3 + $0x1b4] sm:$0xf0] }
  0x4e   : > { %781 = vmatpush.bf16.msra.mxu3 %v2169_v10  ;;  %v3493_v50 = vld [vmem:[%s3850_s0] sm:$0xff]  ;;  %v2948_v51 = vld [vmem:[#allocation3 + $0x19c] sm:$0xf]  ;;  %v2301_v53 = vor.u32 %v2951_v44, %v2300_v41  ;;  %v2305_v54 = vor.u32 %v2947_v45, %v2302_v46  ;;  %v2309_v55 = vor.u32 %v2952_v49, %v2308_v48  ;;  %v2268_v56 = vld [vmem:[#allocation3 + $0x150] sm:$0xf] }
  0x4f   : > { %v2310_v52 = vld [vmem:[#allocation3 + $0x1b8] sm:$0xf0]  ;;  %v2943_v57 = vld [vmem:[#allocation3 + $0x16c] sm:$0xf0]  ;;  %v2939_v58 = vld [vmem:[#allocation3 + $0x154] sm:$0xf] }
  0x50   : > { %740 = vmatpush.bf16.msra.mxu0 %v2125_v16  ;;  %754 = vmatpush.bf16.msra.mxu1 %v2129_v19  ;;  %v2313_v59 = vor.u32 %v2948_v51, %v2310_v52  ;;  %v2270_v60 = vld [vmem:[#allocation3 + $0x170] sm:$0xf0]  ;;  %v2276_v61 = vld [vmem:[#allocation3 + $0x158] sm:$0xf]  ;;  %v2940_v63 = vld [vmem:[#allocation3 + $0x15c] sm:$0xf]  ;;  %v2269_v1 = vor.u32 %v2943_v57, %v2268_v56 }
  0x51   : > { %768 = vmatpush.bf16.msra.mxu2 %v2133_v20  ;;  %v2944_v62 = vld [vmem:[#allocation3 + $0x174] sm:$0xf0]  ;;  %v2278_v0 = vld [vmem:[#allocation3 + $0x178] sm:$0xf0]  ;;  %v2273_v2 = vor.u32 %v2939_v58, %v2270_v60  ;;  %v2236_v4 = vld [vmem:[#allocation3 + $0x110] sm:$0xf] }
  0x52   : > { %782 = vmatpush.bf16.msra.mxu3 %v2137_v24  ;;  %v2277_v3 = vor.u32 %v2944_v62, %v2276_v61  ;;  %v2935_v5 = vld [vmem:[#allocation3 + $0x12c] sm:$0xf0]  ;;  %v2931_v6 = vld [vmem:[#allocation3 + $0x114] sm:$0xf]  ;;  %v2281_v7 = vor.u32 %v2940_v63, %v2278_v0  ;;  %v2244_v9 = vld [vmem:[#allocation3 + $0x118] sm:$0xf] }
  0x53   : > { %v2238_v8 = vld [vmem:[#allocation3 + $0x130] sm:$0xf0]  ;;  %v2936_v10 = vld [vmem:[#allocation3 + $0x134] sm:$0xf0]  ;;  %v2932_v11 = vld [vmem:[#allocation3 + $0x11c] sm:$0xf]  ;;  %v2237_v13 = vor.u32 %v2935_v5, %v2236_v4 }
  0x54   : > { %741 = vmatpush.bf16.msra.mxu0 %v2093_v31  ;;  %755 = vmatpush.bf16.msra.mxu1 %v2097_v35  ;;  %v2246_v12 = vld [vmem:[#allocation3 + $0x138] sm:$0xf0]  ;;  %v2241_v14 = vor.u32 %v2931_v6, %v2238_v8  ;;  %v2245_v15 = vor.u32 %v2936_v10, %v2244_v9  ;;  %v2204_v16 = vld [vmem:[#allocation3 + $0xd0] sm:$0xf]  ;;  %v2923_v18 = vld [vmem:[#allocation3 + $0xd4] sm:$0xf] }
  0x55   : > { %769 = vmatpush.bf16.msra.mxu2 %v2101_v36  ;;  %v2927_v17 = vld [vmem:[#allocation3 + $0xec] sm:$0xf0]  ;;  %v2249_v19 = vor.u32 %v2932_v11, %v2246_v12  ;;  %v2206_v20 = vld [vmem:[#allocation3 + $0xf0] sm:$0xf0]  ;;  %v2212_v21 = vld [vmem:[#allocation3 + $0xd8] sm:$0xf] }
  0x56   : > { %783 = vmatpush.bf16.msra.mxu3 %v2105_v39  ;;  %v2928_v22 = vld [vmem:[#allocation3 + $0xf4] sm:$0xf0]  ;;  %v2924_v23 = vld [vmem:[#allocation3 + $0xdc] sm:$0xf]  ;;  %v2205_v25 = vor.u32 %v2927_v17, %v2204_v16  ;;  %v2209_v26 = vor.u32 %v2923_v18, %v2206_v20  ;;  %v2172_v28 = vld [vmem:[#allocation3 + $0x90] sm:$0xf] }
  0x57   : > { %742 = vmatmul.bf16.vlgmr.msra.gmra.mxu0 %v3493_v50  ;;  %756 = vmatmul.bf16.vlgmr.msra.gmra.mxu1 %v3493_v50  ;;  %v2214_v24 = vld [vmem:[#allocation3 + $0xf8] sm:$0xf0]  ;;  %v2213_v27 = vor.u32 %v2928_v22, %v2212_v21  ;;  %v2919_v29 = vld [vmem:[#allocation3 + $0xac] sm:$0xf0]  ;;  %v2915_v30 = vld [vmem:[#allocation3 + $0x94] sm:$0xf] }
  0x58   : > { %790 = vmatpush.bf16.msrb.mxu0 %v2333_v40  ;;  %804 = vmatpush.bf16.msrb.mxu1 %v2337_v42  ;;  %v2217_v31 = vor.u32 %v2924_v23, %v2214_v24  ;;  %v2174_v32 = vld [vmem:[#allocation3 + $0xb0] sm:$0xf0]  ;;  %v2180_v33 = vld [vmem:[#allocation3 + $0x98] sm:$0xf]  ;;  %v2916_v35 = vld [vmem:[#allocation3 + $0x9c] sm:$0xf]  ;;  %v2173_v37 = vor.u32 %v2919_v29, %v2172_v28 }
  0x59   : > { %818 = vmatpush.bf16.msrb.mxu2 %v2341_v43  ;;  %784 = vmatmul.bf16.vlgmr.msra.gmra.mxu3 %v3493_v50  ;;  %v2920_v34 = vld [vmem:[#allocation3 + $0xb4] sm:$0xf0]  ;;  %v2182_v36 = vld [vmem:[#allocation3 + $0xb8] sm:$0xf0]  ;;  %v2177_v38 = vor.u32 %v2915_v30, %v2174_v32  ;;  %v2140_v40 = vld [vmem:[#allocation3 + $0x50] sm:$0xf] }
  0x5a   : > { %832 = vmatpush.bf16.msrb.mxu3 %v2345_v47  ;;  %770 = vmatmul.bf16.vlgmr.msra.gmra.mxu2 %v3493_v50  ;;  %v2181_v39 = vor.u32 %v2920_v34, %v2180_v33  ;;  %v2911_v41 = vld [vmem:[#allocation3 + $0x6c] sm:$0xf0]  ;;  %v2907_v42 = vld [vmem:[#allocation3 + $0x54] sm:$0xf]  ;;  %v2185_v43 = vor.u32 %v2916_v35, %v2182_v36  ;;  %v2148_v45 = vld [vmem:[#allocation3 + $0x58] sm:$0xf] }
  0x5b   : > { %v2142_v44 = vld [vmem:[#allocation3 + $0x70] sm:$0xf0]  ;;  %v2912_v46 = vld [vmem:[#allocation3 + $0x74] sm:$0xf0]  ;;  %v2908_v47 = vld [vmem:[#allocation3 + $0x5c] sm:$0xf]  ;;  %v2141_v49 = vor.u32 %v2911_v41, %v2140_v40 }
  0x5c   : > { %791 = vmatpush.bf16.msrb.mxu0 %v2301_v53  ;;  %805 = vmatpush.bf16.msrb.mxu1 %v2305_v54  ;;  %v2150_v48 = vld [vmem:[#allocation3 + $0x78] sm:$0xf0]  ;;  %v2145_v51 = vor.u32 %v2907_v42, %v2142_v44  ;;  %v2149_v52 = vor.u32 %v2912_v46, %v2148_v45  ;;  %v2108_v53 = vld [vmem:[#allocation3 + $0x10] sm:$0xf]  ;;  %v2110_v57 = vld [vmem:[#allocation3 + $0x30] sm:$0xf0] }
  0x5d   : > { %819 = vmatpush.bf16.msrb.mxu2 %v2309_v55  ;;  %v2903_v54 = vld [vmem:[#allocation3 + $0x2c] sm:$0xf0]  ;;  %v2899_v55 = vld [vmem:[#allocation3 + $0x14] sm:$0xf]  ;;  %v2153_v56 = vor.u32 %v2908_v47, %v2150_v48  ;;  %v2116_v58 = vld [vmem:[#allocation3 + $0x18] sm:$0xf] }
  0x5e   : > { %833 = vmatpush.bf16.msrb.mxu3 %v2313_v59  ;;  %v2904_v59 = vld [vmem:[#allocation3 + $0x34] sm:$0xf0]  ;;  %v2900_v60 = vld [vmem:[#allocation3 + $0x1c] sm:$0xf]  ;;  %v2109_v62 = vor.u32 %v2903_v54, %v2108_v53  ;;  %v2113_v63 = vor.u32 %v2899_v55, %v2110_v57 }
  0x5f   : > { %v2118_v61 = vld [vmem:[#allocation3 + $0x38] sm:$0xf0]  ;;  %v2117_v0 = vor.u32 %v2904_v59, %v2116_v58 }
  0x60   : > { %792 = vmatpush.bf16.msrb.mxu0 %v2269_v1  ;;  %806 = vmatpush.bf16.msrb.mxu1 %v2273_v2  ;;  %v2121_v1 = vor.u32 %v2900_v60, %v2118_v61  ;;  %v3506_v2 = vld [vmem:[%s3852_s2] sm:$0xff] }
  0x61   : > { %820 = vmatpush.bf16.msrb.mxu2 %v2277_v3  ;;  %v392_v3 = vperm.slane %v3506_v2, 0  ;;  %v393_v4 = vperm.slane %v3506_v2, 1  ;;  %v394_v9 = vperm.slane %v3506_v2, 2  ;;  %v395_v11 = vperm.slane %v3506_v2, 3 }
  0x62   : > { %834 = vmatpush.bf16.msrb.mxu3 %v2281_v7  ;;  %v396_v34 = vperm.slane %v3506_v2, 4  ;;  %v397_v35 = vperm.slane %v3506_v2, 5  ;;  %v398_v42 = vperm.slane %v3506_v2, 6 }
  0x64   : > { %793 = vmatpush.bf16.msrb.mxu0 %v2237_v13  ;;  %807 = vmatpush.bf16.msrb.mxu1 %v2241_v14 }
  0x65   : > { %821 = vmatpush.bf16.msrb.mxu2 %v2245_v15 }
  0x66   : > { %835 = vmatpush.bf16.msrb.mxu3 %v2249_v19 }
  0x68   : > { %794 = vmatpush.bf16.msrb.mxu0 %v2205_v25  ;;  %808 = vmatpush.bf16.msrb.mxu1 %v2209_v26 }
  0x69   : > { %822 = vmatpush.bf16.msrb.mxu2 %v2213_v27 }
  0x6a   : > { %836 = vmatpush.bf16.msrb.mxu3 %v2217_v31 }
  0x6c   : > { %795 = vmatpush.bf16.msrb.mxu0 %v2173_v37  ;;  %809 = vmatpush.bf16.msrb.mxu1 %v2177_v38 }
  0x6d   : > { %823 = vmatpush.bf16.msrb.mxu2 %v2181_v39 }
  0x6e   : > { %837 = vmatpush.bf16.msrb.mxu3 %v2185_v43  ;;  %v399_v43 = vperm.slane %v3506_v2, 7 }
  0x70   : > { %796 = vmatpush.bf16.msrb.mxu0 %v2141_v49  ;;  %810 = vmatpush.bf16.msrb.mxu1 %v2145_v51 }
  0x71   : > { %824 = vmatpush.bf16.msrb.mxu2 %v2149_v52 }
  0x72   : > { %838 = vmatpush.bf16.msrb.mxu3 %v2153_v56 }
  0x74   : > { %797 = vmatpush.bf16.msrb.mxu0 %v2109_v62  ;;  %811 = vmatpush.bf16.msrb.mxu1 %v2113_v63 }
  0x75   : > { %825 = vmatpush.bf16.msrb.mxu2 %v2117_v0 }
  0x76   : > { %839 = vmatpush.bf16.msrb.mxu3 %v2121_v1 }
  0x77   : > { %798 = vmatmul.bf16.vlgmr.msrb.gmra.mxu0 %v3493_v50  ;;  %812 = vmatmul.bf16.vlgmr.msrb.gmra.mxu1 %v3493_v50 }
  0x78   : > { %826 = vmatmul.bf16.vlgmr.msrb.gmra.mxu2 %v3493_v50 }
  0x79   : > { %840 = vmatmul.bf16.vlgmr.msrb.gmra.mxu3 %v3493_v50 }
  0xd4   : > { %v743_v5 = vpop.f32.mrf.mxu0  ;;  %v757_v7 = vpop.f32.mrf.mxu1 }
  0xd5   : > { %v744_v6 = vadd.f32 %v743_v5, %v392_v3  ;;  %v758_v8 = vadd.f32 %v757_v7, %v393_v4 }
  0xd7   : > { %v846_v10 = vmax.f32 %v744_v6, 0.0  ;;  %v847_v12 = vmax.f32 %v758_v8, 0.0 }
  0xd9   : > { %v862_v13 = vpack.c.bf16 %v847_v12, %v846_v10 }
  0xdb   : > { %870 = vst [vmem:[#allocation2] sm:$0xff] %v862_v13 }
  0xdc   : > { %v785_v15 = vpop.f32.mrf.mxu3  ;;  %v745_v18 = vpop.f32.mrf.mxu0 }
  0xdd   : > { %v771_v50 = vpop.f32.mrf.mxu2  ;;  %v786_v16 = vadd.f32 %v785_v15, %v395_v11  ;;  %v746_v20 = vadd.f32 %v745_v18, %v392_v3  ;;  %v759_v21 = vpop.f32.mrf.mxu1 }
  0xde   : > { %v772_v14 = vadd.f32 %v771_v50, %v394_v9  ;;  %v760_v22 = vadd.f32 %v759_v21, %v393_v4 }
  0xdf   : > { %v849_v19 = vmax.f32 %v786_v16, 0.0  ;;  %v854_v24 = vmax.f32 %v746_v20, 0.0 }
  0xe0   : > { %v848_v17 = vmax.f32 %v772_v14, 0.0  ;;  %v855_v25 = vmax.f32 %v760_v22, 0.0 }
  0xe2   : > { %v863_v23 = vpack.c.bf16 %v849_v19, %v848_v17  ;;  %v866_v27 = vpack.c.bf16 %v855_v25, %v854_v24 }
  0xe4   : > { %871 = vst [vmem:[#allocation2 + $0x8] sm:$0xff] %v863_v23  ;;  %v787_v29 = vpop.f32.mrf.mxu3 }
  0xe5   : > { %v773_v26 = vpop.f32.mrf.mxu2  ;;  %v788_v30 = vadd.f32 %v787_v29, %v395_v11  ;;  %874 = vst [vmem:[#allocation2 + $0x20] sm:$0xff] %v866_v27 }
  0xe6   : > { %v774_v28 = vadd.f32 %v773_v26, %v394_v9 }
  0xe7   : > { %v857_v32 = vmax.f32 %v788_v30, 0.0 }
  0xe8   : > { %v856_v31 = vmax.f32 %v774_v28, 0.0 }
  0xea   : > { %v867_v33 = vpack.c.bf16 %v857_v32, %v856_v31 }
  0xec   : > { %875 = vst [vmem:[#allocation2 + $0x28] sm:$0xff] %v867_v33 }
  0xf4   : > { %v799_v36 = vpop.f32.mrf.mxu0  ;;  %v813_v38 = vpop.f32.mrf.mxu1 }
  0xf5   : > { %v800_v37 = vadd.f32 %v799_v36, %v396_v34  ;;  %v814_v39 = vadd.f32 %v813_v38, %v397_v35 }
  0xf7   : > { %v850_v40 = vmax.f32 %v800_v37, 0.0  ;;  %v851_v41 = vmax.f32 %v814_v39, 0.0 }
  0xf9   : > { %v864_v44 = vpack.c.bf16 %v851_v41, %v850_v40 }
  0xfb   : > { %v827_v45 = vpop.f32.mrf.mxu2  ;;  %872 = vst [vmem:[#allocation2 + $0x10] sm:$0xff] %v864_v44 }
  0xfc   : > { %v828_v46 = vadd.f32 %v827_v45, %v398_v42  ;;  %v841_v47 = vpop.f32.mrf.mxu3  ;;  %v801_v48 = vpop.f32.mrf.mxu0 }
  0xfd   : > { %v842_v49 = vadd.f32 %v841_v47, %v399_v43  ;;  %v802_v51 = vadd.f32 %v801_v48, %v396_v34  ;;  %v815_v52 = vpop.f32.mrf.mxu1 }
  0xfe   : > { %v852_v53 = vmax.f32 %v828_v46, 0.0  ;;  %v816_v54 = vadd.f32 %v815_v52, %v397_v35 }
  0xff   : > { %v853_v55 = vmax.f32 %v842_v49, 0.0  ;;  %v858_v56 = vmax.f32 %v802_v51, 0.0 }
 0x100   : > { %v859_v57 = vmax.f32 %v816_v54, 0.0 }
 0x101   : > { %v865_v58 = vpack.c.bf16 %v853_v55, %v852_v53 }
 0x102   : > { %v868_v59 = vpack.c.bf16 %v859_v57, %v858_v56 }
 0x103   : > { %873 = vst [vmem:[#allocation2 + $0x18] sm:$0xff] %v865_v58  ;;  %v829_v60 = vpop.f32.mrf.mxu2 }
 0x104   : > { %876 = vst [vmem:[#allocation2 + $0x30] sm:$0xff] %v868_v59  ;;  %v830_v61 = vadd.f32 %v829_v60, %v398_v42  ;;  %v843_v62 = vpop.f32.mrf.mxu3 }
 0x105   : > { %v844_v63 = vadd.f32 %v843_v62, %v399_v43 }
 0x106   : > { %v860_v0 = vmax.f32 %v830_v61, 0.0 }
 0x107   : > { %v861_v1 = vmax.f32 %v844_v63, 0.0 }
 0x109   : > { %v869_v2 = vpack.c.bf16 %v861_v1, %v860_v0 }
 0x10b   : > { %877 = vst [vmem:[#allocation2 + $0x38] sm:$0xff] %v869_v2 }
 0x10c PF: > { %v2436_v3 = vld [vmem:[%s3473_s25 + $0x70] sm:$0xf]  ;;  %v2984_v4 = vld [vmem:[%s3473_s25 + $0x74] sm:$0xf0]  ;;  %v2428_v13 = vld [vmem:[%s3473_s25 + $0x60] sm:$0xf] }
 0x10d   : > { %v2500_v5 = vld [vmem:[%s3473_s25 + $0xf0] sm:$0xf]  ;;  %v2437_v6 = vor.u32 %v2984_v4, %v2436_v3  ;;  %v3000_v7 = vld [vmem:[%s3473_s25 + $0xf4] sm:$0xf0]  ;;  %v2982_v15 = vld [vmem:[%s3473_s25 + $0x64] sm:$0xf0] }
 0x10e   : > { %v2564_v8 = vld [vmem:[%s3473_s25 + $0x170] sm:$0xf]  ;;  %v3016_v9 = vld [vmem:[%s3473_s25 + $0x174] sm:$0xf0]  ;;  %v2501_v10 = vor.u32 %v3000_v7, %v2500_v5  ;;  %v2492_v16 = vld [vmem:[%s3473_s25 + $0xe0] sm:$0xf]  ;;  %v2429_v18 = vor.u32 %v2982_v15, %v2428_v13 }
 0x10f   : > { %v2565_v11 = vor.u32 %v3016_v9, %v2564_v8  ;;  %v2628_v12 = vld [vmem:[%s3473_s25 + $0x1f0] sm:$0xf]  ;;  %v3032_v50 = vld [vmem:[%s3473_s25 + $0x1f4] sm:$0xf0]  ;;  %1700 = vmatpush.bf16.msra.mxu0 %v2437_v6  ;;  %v2998_v17 = vld [vmem:[%s3473_s25 + $0xe4] sm:$0xf0] }
 0x110   : > { %v2629_v14 = vor.u32 %v3032_v50, %v2628_v12  ;;  %1714 = vmatpush.bf16.msra.mxu1 %v2501_v10  ;;  %v2493_v19 = vor.u32 %v2998_v17, %v2492_v16  ;;  %v2556_v20 = vld [vmem:[%s3473_s25 + $0x160] sm:$0xf]  ;;  %v3014_v21 = vld [vmem:[%s3473_s25 + $0x164] sm:$0xf0]  ;;  %v2420_v25 = vld [vmem:[%s3473_s25 + $0x50] sm:$0xf] }
 0x111   : > { %1728 = vmatpush.bf16.msra.mxu2 %v2565_v11  ;;  %v2620_v22 = vld [vmem:[%s3473_s25 + $0x1e0] sm:$0xf]  ;;  %v2557_v23 = vor.u32 %v3014_v21, %v2556_v20  ;;  %v3030_v24 = vld [vmem:[%s3473_s25 + $0x1e4] sm:$0xf0]  ;;  %v2980_v26 = vld [vmem:[%s3473_s25 + $0x54] sm:$0xf0] }
 0x112   : > { %1742 = vmatpush.bf16.msra.mxu3 %v2629_v14  ;;  %v2621_v27 = vor.u32 %v3030_v24, %v2620_v22  ;;  %v2484_v28 = vld [vmem:[%s3473_s25 + $0xd0] sm:$0xf]  ;;  %v2996_v29 = vld [vmem:[%s3473_s25 + $0xd4] sm:$0xf0]  ;;  %v2421_v31 = vor.u32 %v2980_v26, %v2420_v25  ;;  %v2412_v37 = vld [vmem:[%s3473_s25 + $0x40] sm:$0xf] }
 0x113   : > { %v2548_v30 = vld [vmem:[%s3473_s25 + $0x150] sm:$0xf]  ;;  %1701 = vmatpush.bf16.msra.mxu0 %v2429_v18  ;;  %v3012_v32 = vld [vmem:[%s3473_s25 + $0x154] sm:$0xf0]  ;;  %v2485_v35 = vor.u32 %v2996_v29, %v2484_v28  ;;  %v2978_v38 = vld [vmem:[%s3473_s25 + $0x44] sm:$0xf0] }
 0x114   : > { %v2612_v33 = vld [vmem:[%s3473_s25 + $0x1d0] sm:$0xf]  ;;  %v3028_v34 = vld [vmem:[%s3473_s25 + $0x1d4] sm:$0xf0]  ;;  %1715 = vmatpush.bf16.msra.mxu1 %v2493_v19  ;;  %v2549_v36 = vor.u32 %v3012_v32, %v2548_v30  ;;  %v2476_v39 = vld [vmem:[%s3473_s25 + $0xc0] sm:$0xf]  ;;  %v2413_v46 = vor.u32 %v2978_v38, %v2412_v37 }
 0x115   : > { %1729 = vmatpush.bf16.msra.mxu2 %v2557_v23  ;;  %v2613_v40 = vor.u32 %v3028_v34, %v2612_v33  ;;  %v2994_v41 = vld [vmem:[%s3473_s25 + $0xc4] sm:$0xf0]  ;;  %v2540_v42 = vld [vmem:[%s3473_s25 + $0x140] sm:$0xf]  ;;  %v2404_v49 = vld [vmem:[%s3473_s25 + $0x30] sm:$0xf] }
 0x116   : > { %1743 = vmatpush.bf16.msra.mxu3 %v2621_v27  ;;  %v3010_v43 = vld [vmem:[%s3473_s25 + $0x144] sm:$0xf0]  ;;  %v2604_v44 = vld [vmem:[%s3473_s25 + $0x1c0] sm:$0xf]  ;;  %v2477_v47 = vor.u32 %v2994_v41, %v2476_v39  ;;  %v2976_v51 = vld [vmem:[%s3473_s25 + $0x34] sm:$0xf0] }
 0x117   : > { %v3026_v45 = vld [vmem:[%s3473_s25 + $0x1c4] sm:$0xf0]  ;;  %1702 = vmatpush.bf16.msra.mxu0 %v2421_v31  ;;  %v2541_v48 = vor.u32 %v3010_v43, %v2540_v42  ;;  %v2468_v52 = vld [vmem:[%s3473_s25 + $0xb0] sm:$0xf]  ;;  %v2992_v54 = vld [vmem:[%s3473_s25 + $0xb4] sm:$0xf0]  ;;  %v2405_v59 = vor.u32 %v2976_v51, %v2404_v49 }
 0x118   : > { %1716 = vmatpush.bf16.msra.mxu1 %v2485_v35  ;;  %v2605_v53 = vor.u32 %v3026_v45, %v2604_v44  ;;  %v2532_v55 = vld [vmem:[%s3473_s25 + $0x130] sm:$0xf]  ;;  %v3008_v56 = vld [vmem:[%s3473_s25 + $0x134] sm:$0xf0]  ;;  %v2469_v60 = vor.u32 %v2992_v54, %v2468_v52  ;;  %v2396_v62 = vld [vmem:[%s3473_s25 + $0x20] sm:$0xf] }
 0x119   : > { %1730 = vmatpush.bf16.msra.mxu2 %v2549_v36  ;;  %v2596_v57 = vld [vmem:[%s3473_s25 + $0x1b0] sm:$0xf]  ;;  %v3024_v58 = vld [vmem:[%s3473_s25 + $0x1b4] sm:$0xf0]  ;;  %v2533_v61 = vor.u32 %v3008_v56, %v2532_v55  ;;  %v2974_v63 = vld [vmem:[%s3473_s25 + $0x24] sm:$0xf0] }
 0x11a   : > { %1744 = vmatpush.bf16.msra.mxu3 %v2613_v40  ;;  %v2460_v0 = vld [vmem:[%s3473_s25 + $0xa0] sm:$0xf]  ;;  %v2597_v1 = vor.u32 %v3024_v58, %v2596_v57  ;;  %v2990_v2 = vld [vmem:[%s3473_s25 + $0xa4] sm:$0xf0]  ;;  %v2397_v7 = vor.u32 %v2974_v63, %v2396_v62  ;;  %v2388_v10 = vld [vmem:[%s3473_s25 + $0x10] sm:$0xf] }
 0x11b   : > { %1703 = vmatpush.bf16.msra.mxu0 %v2413_v46  ;;  %v2524_v3 = vld [vmem:[%s3473_s25 + $0x120] sm:$0xf]  ;;  %v3006_v4 = vld [vmem:[%s3473_s25 + $0x124] sm:$0xf0]  ;;  %v2461_v8 = vor.u32 %v2990_v2, %v2460_v0  ;;  %v2972_v11 = vld [vmem:[%s3473_s25 + $0x14] sm:$0xf0] }
 0x11c   : > { %1717 = vmatpush.bf16.msra.mxu1 %v2477_v47  ;;  %v2588_v5 = vld [vmem:[%s3473_s25 + $0x1a0] sm:$0xf]  ;;  %v3022_v6 = vld [vmem:[%s3473_s25 + $0x1a4] sm:$0xf0]  ;;  %v2525_v9 = vor.u32 %v3006_v4, %v2524_v3  ;;  %v2452_v12 = vld [vmem:[%s3473_s25 + $0x90] sm:$0xf]  ;;  %v2389_v18 = vor.u32 %v2972_v11, %v2388_v10 }
 0x11d   : > { %1731 = vmatpush.bf16.msra.mxu2 %v2541_v48  ;;  %v2589_v50 = vor.u32 %v3022_v6, %v2588_v5  ;;  %v2988_v13 = vld [vmem:[%s3473_s25 + $0x94] sm:$0xf0]  ;;  %v2516_v14 = vld [vmem:[%s3473_s25 + $0x110] sm:$0xf]  ;;  %v2380_v19 = vld [vmem:[%s3473_s25] sm:$0xf] }
 0x11e   : > { %1745 = vmatpush.bf16.msra.mxu3 %v2605_v53  ;;  %v3004_v15 = vld [vmem:[%s3473_s25 + $0x114] sm:$0xf0]  ;;  %v2580_v16 = vld [vmem:[%s3473_s25 + $0x190] sm:$0xf]  ;;  %v2970_v20 = vld [vmem:[%s3473_s25 + $0x4] sm:$0xf0]  ;;  %v2453_v21 = vor.u32 %v2988_v13, %v2452_v12 }
 0x11f   : > { %1704 = vmatpush.bf16.msra.mxu0 %v2405_v59  ;;  %v3020_v17 = vld [vmem:[%s3473_s25 + $0x194] sm:$0xf0]  ;;  %v2517_v22 = vor.u32 %v3004_v15, %v2516_v14  ;;  %v2444_v23 = vld [vmem:[%s3473_s25 + $0x80] sm:$0xf]  ;;  %v2986_v24 = vld [vmem:[%s3473_s25 + $0x84] sm:$0xf0]  ;;  %v2381_v33 = vor.u32 %v2970_v20, %v2380_v19 }
 0x120   : > { %1718 = vmatpush.bf16.msra.mxu1 %v2469_v60  ;;  %v2508_v25 = vld [vmem:[%s3473_s25 + $0x100] sm:$0xf]  ;;  %v2581_v26 = vor.u32 %v3020_v17, %v2580_v16  ;;  %v3002_v27 = vld [vmem:[%s3473_s25 + $0x104] sm:$0xf0]  ;;  %v2692_v30 = vld [vmem:[%s3473_s25 + $0x270] sm:$0xf]  ;;  %v2445_v37 = vor.u32 %v2986_v24, %v2444_v23 }
 0x121   : > { %1732 = vmatpush.bf16.msra.mxu2 %v2533_v61  ;;  %v2572_v28 = vld [vmem:[%s3473_s25 + $0x180] sm:$0xf]  ;;  %v3018_v29 = vld [vmem:[%s3473_s25 + $0x184] sm:$0xf0]  ;;  %v3048_v31 = vld [vmem:[%s3473_s25 + $0x274] sm:$0xf0]  ;;  %v2509_v38 = vor.u32 %v3002_v27, %v2508_v25 }
 0x122   : > { %1746 = vmatpush.bf16.msra.mxu3 %v2597_v1  ;;  %v2756_v32 = vld [vmem:[%s3473_s25 + $0x2f0] sm:$0xf]  ;;  %v3064_v34 = vld [vmem:[%s3473_s25 + $0x2f4] sm:$0xf0]  ;;  %v2573_v41 = vor.u32 %v3018_v29, %v2572_v28  ;;  %v2693_v42 = vor.u32 %v3048_v31, %v2692_v30  ;;  %v2684_v43 = vld [vmem:[%s3473_s25 + $0x260] sm:$0xf] }
 0x123   : > { %1705 = vmatpush.bf16.msra.mxu0 %v2397_v7  ;;  %v2820_v35 = vld [vmem:[%s3473_s25 + $0x370] sm:$0xf]  ;;  %v3080_v36 = vld [vmem:[%s3473_s25 + $0x374] sm:$0xf0]  ;;  %v3046_v44 = vld [vmem:[%s3473_s25 + $0x264] sm:$0xf0]  ;;  %v2757_v45 = vor.u32 %v3064_v34, %v2756_v32 }
 0x124   : > { %1719 = vmatpush.bf16.msra.mxu1 %v2461_v8  ;;  %v2884_v39 = vld [vmem:[%s3473_s25 + $0x3f0] sm:$0xf]  ;;  %v3096_v40 = vld [vmem:[%s3473_s25 + $0x3f4] sm:$0xf0]  ;;  %v2821_v46 = vor.u32 %v3080_v36, %v2820_v35  ;;  %v2748_v47 = vld [vmem:[%s3473_s25 + $0x2e0] sm:$0xf]  ;;  %v2685_v58 = vor.u32 %v3046_v44, %v2684_v43 }
 0x125   : > { %1733 = vmatpush.bf16.msra.mxu2 %v2525_v9  ;;  %v3062_v48 = vld [vmem:[%s3473_s25 + $0x2e4] sm:$0xf0]  ;;  %v2812_v49 = vld [vmem:[%s3473_s25 + $0x360] sm:$0xf]  ;;  %v2885_v51 = vor.u32 %v3096_v40, %v2884_v39  ;;  %v2676_v59 = vld [vmem:[%s3473_s25 + $0x250] sm:$0xf] }
 0x126   : > { %1747 = vmatpush.bf16.msra.mxu3 %v2589_v50  ;;  %v3078_v52 = vld [vmem:[%s3473_s25 + $0x364] sm:$0xf0]  ;;  %v2876_v53 = vld [vmem:[%s3473_s25 + $0x3e0] sm:$0xf]  ;;  %v3044_v60 = vld [vmem:[%s3473_s25 + $0x254] sm:$0xf0]  ;;  %v2749_v63 = vor.u32 %v3062_v48, %v2748_v47 }
 0x127   : > { %1706 = vmatpush.bf16.msra.mxu0 %v2389_v18  ;;  %v3094_v54 = vld [vmem:[%s3473_s25 + $0x3e4] sm:$0xf0]  ;;  %v2348_v55 = vld [vmem:[#allocation2] sm:$0xf]  ;;  %v2813_v0 = vor.u32 %v3078_v52, %v2812_v49  ;;  %v2740_v1 = vld [vmem:[%s3473_s25 + $0x2d0] sm:$0xf]  ;;  %v2677_v12 = vor.u32 %v3044_v60, %v2676_v59 }
 0x128   : > { %1720 = vmatpush.bf16.msra.mxu1 %v2453_v21  ;;  %v2965_v56 = vld [vmem:[#allocation2 + $0x1c] sm:$0xf0]  ;;  %v2356_v57 = vld [vmem:[#allocation2 + $0x8] sm:$0xf]  ;;  %v3060_v2 = vld [vmem:[%s3473_s25 + $0x2d4] sm:$0xf0]  ;;  %v2877_v5 = vor.u32 %v3094_v54, %v2876_v53 }
 0x129   : > { %1734 = vmatpush.bf16.msra.mxu2 %v2517_v22  ;;  %v3598_v61 = vor.u32 %v2965_v56, %v2348_v55  ;;  %v2966_v62 = vld [vmem:[#allocation2 + $0x24] sm:$0xf0]  ;;  %v2804_v3 = vld [vmem:[%s3473_s25 + $0x350] sm:$0xf]  ;;  %v3076_v6 = vld [vmem:[%s3473_s25 + $0x354] sm:$0xf0]  ;;  %v2741_v14 = vor.u32 %v3060_v2, %v2740_v1 }
 0x12a   : > { %1748 = vmatpush.bf16.msra.mxu3 %v2581_v26  ;;  %v3603_v4 = vor.u32 %v2966_v62, %v2356_v57  ;;  %v2868_v7 = vld [vmem:[%s3473_s25 + $0x3d0] sm:$0xf]  ;;  %v3092_v8 = vld [vmem:[%s3473_s25 + $0x3d4] sm:$0xf0]  ;;  %v2961_v9 = vld [vmem:[#allocation2 + $0x4] sm:$0xf]  ;;  %v2805_v15 = vor.u32 %v3076_v6, %v2804_v3 }
 0x12b   : > { %1707 = vmatpush.bf16.msra.mxu0 %v2381_v33  ;;  %v2350_v10 = vld [vmem:[#allocation2 + $0x20] sm:$0xf0]  ;;  %v2962_v11 = vld [vmem:[#allocation2 + $0xc] sm:$0xf]  ;;  %v2668_v16 = vld [vmem:[%s3473_s25 + $0x240] sm:$0xf]  ;;  %v2869_v20 = vor.u32 %v3092_v8, %v2868_v7 }
 0x12c   : > { %1721 = vmatpush.bf16.msra.mxu1 %v2445_v37  ;;  %v3610_v50 = vor.u32 %v2961_v9, %v2350_v10  ;;  %v2358_v13 = vld [vmem:[#allocation2 + $0x28] sm:$0xf0]  ;;  %v3042_v17 = vld [vmem:[%s3473_s25 + $0x244] sm:$0xf0]  ;;  %v2732_v18 = vld [vmem:[%s3473_s25 + $0x2c0] sm:$0xf] }
 0x12d   : > { %1735 = vmatpush.bf16.msra.mxu2 %v2509_v38  ;;  %v3615_v19 = vor.u32 %v2962_v11, %v2358_v13  ;;  %v3058_v21 = vld [vmem:[%s3473_s25 + $0x2c4] sm:$0xf0]  ;;  %v2796_v22 = vld [vmem:[%s3473_s25 + $0x340] sm:$0xf]  ;;  %v2669_v26 = vor.u32 %v3042_v17, %v2668_v16  ;;  %v2660_v29 = vld [vmem:[%s3473_s25 + $0x230] sm:$0xf] }
 0x12e   : > { %1749 = vmatpush.bf16.msra.mxu3 %v2573_v41  ;;  %1708 = vmatmul.bf16.vlgmr.msra.gmra.mxu0 %v3598_v61  ;;  %v3074_v23 = vld [vmem:[%s3473_s25 + $0x344] sm:$0xf0]  ;;  %v2860_v24 = vld [vmem:[%s3473_s25 + $0x3c0] sm:$0xf]  ;;  %v2733_v27 = vor.u32 %v3058_v21, %v2732_v18  ;;  %v3040_v30 = vld [vmem:[%s3473_s25 + $0x234] sm:$0xf0] }
 0x12f   : > { %1756 = vmatpush.bf16.msrb.mxu0 %v2693_v42  ;;  %1722 = vmatmul.bf16.vlgmr.msra.gmra.mxu1 %v3610_v50  ;;  %v3090_v25 = vld [vmem:[%s3473_s25 + $0x3c4] sm:$0xf0]  ;;  %v2797_v28 = vor.u32 %v3074_v23, %v2796_v22  ;;  %v2724_v31 = vld [vmem:[%s3473_s25 + $0x2b0] sm:$0xf]  ;;  %v3056_v33 = vld [vmem:[%s3473_s25 + $0x2b4] sm:$0xf0]  ;;  %v2661_v38 = vor.u32 %v3040_v30, %v2660_v29 }
 0x130   : > { %1770 = vmatpush.bf16.msrb.mxu1 %v2757_v45  ;;  %1736 = vmatmul.bf16.vlgmr.msra.gmra.mxu2 %v3603_v4  ;;  %v2861_v32 = vor.u32 %v3090_v25, %v2860_v24  ;;  %v2788_v34 = vld [vmem:[%s3473_s25 + $0x330] sm:$0xf]  ;;  %v3072_v35 = vld [vmem:[%s3473_s25 + $0x334] sm:$0xf0]  ;;  %v2725_v39 = vor.u32 %v3056_v33, %v2724_v31  ;;  %v2652_v41 = vld [vmem:[%s3473_s25 + $0x220] sm:$0xf] }
 0x131   : > { %1784 = vmatpush.bf16.msrb.mxu2 %v2821_v46  ;;  %1750 = vmatmul.bf16.vlgmr.msra.gmra.mxu3 %v3615_v19  ;;  %v2852_v36 = vld [vmem:[%s3473_s25 + $0x3b0] sm:$0xf]  ;;  %v3088_v37 = vld [vmem:[%s3473_s25 + $0x3b4] sm:$0xf0]  ;;  %v2789_v40 = vor.u32 %v3072_v35, %v2788_v34  ;;  %v3038_v42 = vld [vmem:[%s3473_s25 + $0x224] sm:$0xf0] }
 0x132   : > { %1798 = vmatpush.bf16.msrb.mxu3 %v2885_v51  ;;  %v2716_v43 = vld [vmem:[%s3473_s25 + $0x2a0] sm:$0xf]  ;;  %v2853_v44 = vor.u32 %v3088_v37, %v2852_v36  ;;  %v3054_v45 = vld [vmem:[%s3473_s25 + $0x2a4] sm:$0xf0]  ;;  %v2653_v51 = vor.u32 %v3038_v42, %v2652_v41  ;;  %v2644_v52 = vld [vmem:[%s3473_s25 + $0x210] sm:$0xf] }
 0x133   : > { %1757 = vmatpush.bf16.msrb.mxu0 %v2685_v58  ;;  %v2780_v46 = vld [vmem:[%s3473_s25 + $0x320] sm:$0xf]  ;;  %v3070_v47 = vld [vmem:[%s3473_s25 + $0x324] sm:$0xf0]  ;;  %v2717_v53 = vor.u32 %v3054_v45, %v2716_v43  ;;  %v3036_v55 = vld [vmem:[%s3473_s25 + $0x214] sm:$0xf0] }
 0x134   : > { %1771 = vmatpush.bf16.msrb.mxu1 %v2749_v63  ;;  %v2844_v48 = vld [vmem:[%s3473_s25 + $0x3a0] sm:$0xf]  ;;  %v3086_v49 = vld [vmem:[%s3473_s25 + $0x3a4] sm:$0xf0]  ;;  %v2781_v54 = vor.u32 %v3070_v47, %v2780_v46  ;;  %v2708_v56 = vld [vmem:[%s3473_s25 + $0x290] sm:$0xf]  ;;  %v2645_v2 = vor.u32 %v3036_v55, %v2644_v52 }
 0x135   : > { %1785 = vmatpush.bf16.msrb.mxu2 %v2813_v0  ;;  %v3052_v57 = vld [vmem:[%s3473_s25 + $0x294] sm:$0xf0]  ;;  %v2845_v58 = vor.u32 %v3086_v49, %v2844_v48  ;;  %v2772_v59 = vld [vmem:[%s3473_s25 + $0x310] sm:$0xf]  ;;  %v2636_v0 = vld [vmem:[%s3473_s25 + $0x200] sm:$0xf] }
 0x136   : > { %1799 = vmatpush.bf16.msrb.mxu3 %v2877_v5  ;;  %v3068_v60 = vld [vmem:[%s3473_s25 + $0x314] sm:$0xf0]  ;;  %v2836_v62 = vld [vmem:[%s3473_s25 + $0x390] sm:$0xf]  ;;  %v3034_v1 = vld [vmem:[%s3473_s25 + $0x204] sm:$0xf0]  ;;  %v2709_v8 = vor.u32 %v3052_v57, %v2708_v56 }
 0x137   : > { %1758 = vmatpush.bf16.msrb.mxu0 %v2677_v12  ;;  %v3084_v63 = vld [vmem:[%s3473_s25 + $0x394] sm:$0xf0]  ;;  %v2700_v3 = vld [vmem:[%s3473_s25 + $0x280] sm:$0xf]  ;;  %v3050_v5 = vld [vmem:[%s3473_s25 + $0x284] sm:$0xf0]  ;;  %v2773_v9 = vor.u32 %v3068_v60, %v2772_v59  ;;  %v2637_v21 = vor.u32 %v3034_v1, %v2636_v0 }
 0x138   : > { %1772 = vmatpush.bf16.msrb.mxu1 %v2741_v14  ;;  %v2764_v6 = vld [vmem:[%s3473_s25 + $0x300] sm:$0xf]  ;;  %v3066_v7 = vld [vmem:[%s3473_s25 + $0x304] sm:$0xf0]  ;;  %v2983_v12 = vld [vmem:[%s3473_s25 + $0x74] sm:$0xf]  ;;  %v2837_v13 = vor.u32 %v3084_v63, %v2836_v62  ;;  %v2701_v25 = vor.u32 %v3050_v5, %v2700_v3 }
 0x139   : > { %1786 = vmatpush.bf16.msrb.mxu2 %v2805_v15  ;;  %v2828_v10 = vld [vmem:[%s3473_s25 + $0x380] sm:$0xf]  ;;  %v3082_v11 = vld [vmem:[%s3473_s25 + $0x384] sm:$0xf0]  ;;  %v2438_v14 = vld [vmem:[%s3473_s25 + $0x78] sm:$0xf0] }
 0x13a   : > { %1800 = vmatpush.bf16.msrb.mxu3 %v2869_v20  ;;  %v2999_v15 = vld [vmem:[%s3473_s25 + $0xf4] sm:$0xf]  ;;  %v2502_v16 = vld [vmem:[%s3473_s25 + $0xf8] sm:$0xf0]  ;;  %v2364_v23 = vld [vmem:[#allocation2 + $0x10] sm:$0xf]  ;;  %v2829_v30 = vor.u32 %v3082_v11, %v2828_v10  ;;  %v2441_v31 = vor.u32 %v2983_v12, %v2438_v14 }
 0x13b   : > { %1759 = vmatpush.bf16.msrb.mxu0 %v2669_v26  ;;  %v3015_v17 = vld [vmem:[%s3473_s25 + $0x174] sm:$0xf]  ;;  %v2566_v18 = vld [vmem:[%s3473_s25 + $0x178] sm:$0xf0]  ;;  %v2967_v24 = vld [vmem:[#allocation2 + $0x2c] sm:$0xf0]  ;;  %v2765_v26 = vor.u32 %v3066_v7, %v2764_v6  ;;  %v2505_v35 = vor.u32 %v2999_v15, %v2502_v16 }
 0x13c   : > { %1773 = vmatpush.bf16.msrb.mxu1 %v2733_v27  ;;  %v3031_v20 = vld [vmem:[%s3473_s25 + $0x1f4] sm:$0xf]  ;;  %v2630_v22 = vld [vmem:[%s3473_s25 + $0x1f8] sm:$0xf0]  ;;  %v2372_v27 = vld [vmem:[#allocation2 + $0x18] sm:$0xf]  ;;  %v2569_v36 = vor.u32 %v3015_v17, %v2566_v18  ;;  %v3667_v41 = vor.u32 %v2967_v24, %v2364_v23 }
 0x13d   : > { %1787 = vmatpush.bf16.msrb.mxu2 %v2797_v28  ;;  %v2968_v28 = vld [vmem:[#allocation2 + $0x34] sm:$0xf0]  ;;  %v2963_v29 = vld [vmem:[#allocation2 + $0x14] sm:$0xf]  ;;  %v2964_v33 = vld [vmem:[#allocation2 + $0x1c] sm:$0xf] }
 0x13e   : > { %1801 = vmatpush.bf16.msrb.mxu3 %v2861_v32  ;;  %v2366_v32 = vld [vmem:[#allocation2 + $0x30] sm:$0xf0]  ;;  %v2374_v34 = vld [vmem:[#allocation2 + $0x38] sm:$0xf0]  ;;  %v2981_v37 = vld [vmem:[%s3473_s25 + $0x64] sm:$0xf]  ;;  %v3672_v45 = vor.u32 %v2968_v28, %v2372_v27 }
 0x13f   : > { %1760 = vmatpush.bf16.msrb.mxu0 %v2661_v38  ;;  %v2430_v38 = vld [vmem:[%s3473_s25 + $0x68] sm:$0xf0]  ;;  %v3013_v43 = vld [vmem:[%s3473_s25 + $0x164] sm:$0xf]  ;;  %v3674_v46 = vor.u32 %v2963_v29, %v2366_v32  ;;  %v3678_v49 = vor.u32 %v2964_v33, %v2374_v34  ;;  %v2422_v55 = vld [vmem:[%s3473_s25 + $0x58] sm:$0xf0] }
 0x140   : > { %1774 = vmatpush.bf16.msrb.mxu1 %v2725_v39  ;;  %v2997_v39 = vld [vmem:[%s3473_s25 + $0xe4] sm:$0xf]  ;;  %v2494_v42 = vld [vmem:[%s3473_s25 + $0xe8] sm:$0xf0]  ;;  %v2995_v56 = vld [vmem:[%s3473_s25 + $0xd4] sm:$0xf] }
 0x141   : > { %1788 = vmatpush.bf16.msrb.mxu2 %v2789_v40  ;;  %v2633_v40 = vor.u32 %v3031_v20, %v2630_v22  ;;  %v3029_v47 = vld [vmem:[%s3473_s25 + $0x1e4] sm:$0xf]  ;;  %v2622_v48 = vld [vmem:[%s3473_s25 + $0x1e8] sm:$0xf0]  ;;  %v2497_v52 = vor.u32 %v2997_v39, %v2494_v42  ;;  %v3011_v59 = vld [vmem:[%s3473_s25 + $0x154] sm:$0xf] }
 0x142   : > { %1802 = vmatpush.bf16.msrb.mxu3 %v2853_v44  ;;  %v2558_v44 = vld [vmem:[%s3473_s25 + $0x168] sm:$0xf0]  ;;  %v2625_v57 = vor.u32 %v3029_v47, %v2622_v48  ;;  %v2550_v60 = vld [vmem:[%s3473_s25 + $0x158] sm:$0xf0]  ;;  %v3027_v62 = vld [vmem:[%s3473_s25 + $0x1d4] sm:$0xf] }
 0x143   : > { %1761 = vmatpush.bf16.msrb.mxu0 %v2653_v51  ;;  %v2433_v51 = vor.u32 %v2981_v37, %v2430_v38  ;;  %v2614_v63 = vld [vmem:[%s3473_s25 + $0x1d8] sm:$0xf0]  ;;  %v2977_v3 = vld [vmem:[%s3473_s25 + $0x44] sm:$0xf]  ;;  %v2414_v5 = vld [vmem:[%s3473_s25 + $0x48] sm:$0xf0] }
 0x144   : > { %1775 = vmatpush.bf16.msrb.mxu1 %v2717_v53  ;;  %v2561_v53 = vor.u32 %v3013_v43, %v2558_v44  ;;  %v2993_v6 = vld [vmem:[%s3473_s25 + $0xc4] sm:$0xf]  ;;  %v2617_v7 = vor.u32 %v3027_v62, %v2614_v63  ;;  %v2542_v10 = vld [vmem:[%s3473_s25 + $0x148] sm:$0xf0]  ;;  %v2975_v16 = vld [vmem:[%s3473_s25 + $0x34] sm:$0xf] }
 0x145   : > { %1789 = vmatpush.bf16.msrb.mxu2 %v2781_v54  ;;  %v2979_v54 = vld [vmem:[%s3473_s25 + $0x54] sm:$0xf]  ;;  %v3025_v11 = vld [vmem:[%s3473_s25 + $0x1c4] sm:$0xf]  ;;  %v2606_v12 = vld [vmem:[%s3473_s25 + $0x1c8] sm:$0xf0] }
 0x146   : > { %1803 = vmatpush.bf16.msrb.mxu3 %v2845_v58  ;;  %v2486_v58 = vld [vmem:[%s3473_s25 + $0xd8] sm:$0xf0]  ;;  %v2425_v0 = vor.u32 %v2979_v54, %v2422_v55  ;;  %v2991_v18 = vld [vmem:[%s3473_s25 + $0xb4] sm:$0xf]  ;;  %v2609_v20 = vor.u32 %v3025_v11, %v2606_v12  ;;  %v2973_v29 = vld [vmem:[%s3473_s25 + $0x24] sm:$0xf] }
 0x147   : > { %1762 = vmatpush.bf16.msrb.mxu0 %v2645_v2  ;;  %v2489_v1 = vor.u32 %v2995_v56, %v2486_v58  ;;  %v2553_v2 = vor.u32 %v3011_v59, %v2550_v60  ;;  %v2406_v17 = vld [vmem:[%s3473_s25 + $0x38] sm:$0xf0]  ;;  %v3007_v22 = vld [vmem:[%s3473_s25 + $0x134] sm:$0xf]  ;;  %v2462_v33 = vld [vmem:[%s3473_s25 + $0xa8] sm:$0xf0] }
 0x148   : > { %1776 = vmatpush.bf16.msrb.mxu1 %v2709_v8  ;;  %v2478_v8 = vld [vmem:[%s3473_s25 + $0xc8] sm:$0xf0]  ;;  %v2534_v23 = vld [vmem:[%s3473_s25 + $0x138] sm:$0xf0]  ;;  %v3023_v24 = vld [vmem:[%s3473_s25 + $0x1b4] sm:$0xf] }
 0x149   : > { %1790 = vmatpush.bf16.msrb.mxu2 %v2773_v9  ;;  %v3009_v9 = vld [vmem:[%s3473_s25 + $0x144] sm:$0xf]  ;;  %v2481_v14 = vor.u32 %v2993_v6, %v2478_v8  ;;  %v2537_v28 = vor.u32 %v3007_v22, %v2534_v23  ;;  %v2590_v37 = vld [vmem:[%s3473_s25 + $0x1a8] sm:$0xf0]  ;;  %v2971_v42 = vld [vmem:[%s3473_s25 + $0x14] sm:$0xf] }
 0x14a   : > { %1804 = vmatpush.bf16.msrb.mxu3 %v2837_v13  ;;  %v2417_v13 = vor.u32 %v2977_v3, %v2414_v5  ;;  %v2545_v15 = vor.u32 %v3009_v9, %v2542_v10  ;;  %v3005_v34 = vld [vmem:[%s3473_s25 + $0x124] sm:$0xf]  ;;  %v2390_v43 = vld [vmem:[%s3473_s25 + $0x18] sm:$0xf0]  ;;  %v2987_v44 = vld [vmem:[%s3473_s25 + $0x94] sm:$0xf] }
 0x14b   : > { %1763 = vmatpush.bf16.msrb.mxu0 %v2637_v21  ;;  %v2470_v21 = vld [vmem:[%s3473_s25 + $0xb8] sm:$0xf0]  ;;  %v2393_v55 = vor.u32 %v2971_v42, %v2390_v43  ;;  %v2969_v56 = vld [vmem:[%s3473_s25 + $0x4] sm:$0xf]  ;;  %v2446_v62 = vld [vmem:[%s3473_s25 + $0x88] sm:$0xf0] }
 0x14c   : > { %1777 = vmatpush.bf16.msrb.mxu1 %v2701_v25  ;;  %v2598_v25 = vld [vmem:[%s3473_s25 + $0x1b8] sm:$0xf0]  ;;  %v2473_v27 = vor.u32 %v2991_v18, %v2470_v21  ;;  %v2985_v60 = vld [vmem:[%s3473_s25 + $0x84] sm:$0xf]  ;;  %v2574_v3 = vld [vmem:[%s3473_s25 + $0x188] sm:$0xf0] }
 0x14d   : > { %1791 = vmatpush.bf16.msrb.mxu2 %v2765_v26  ;;  %v2409_v26 = vor.u32 %v2975_v16, %v2406_v17  ;;  %v2601_v32 = vor.u32 %v3023_v24, %v2598_v25  ;;  %v2454_v48 = vld [vmem:[%s3473_s25 + $0x98] sm:$0xf0]  ;;  %v3001_v63 = vld [vmem:[%s3473_s25 + $0x104] sm:$0xf]  ;;  %v3047_v5 = vld [vmem:[%s3473_s25 + $0x274] sm:$0xf]  ;;  %v2449_v12 = vor.u32 %v2985_v60, %v2446_v62 }
 0x14e   : > { %1805 = vmatpush.bf16.msrb.mxu3 %v2829_v30  ;;  %1764 = vmatmul.bf16.vlgmr.msrb.gmra.mxu0 %v3667_v41  ;;  %v2398_v30 = vld [vmem:[%s3473_s25 + $0x28] sm:$0xf0]  ;;  %v2582_v54 = vld [vmem:[%s3473_s25 + $0x198] sm:$0xf0]  ;;  %v2457_v58 = vor.u32 %v2987_v44, %v2454_v48  ;;  %v3079_v10 = vld [vmem:[%s3473_s25 + $0x374] sm:$0xf] }
 0x14f   : > { %1812 = vmatpush.bf16.msra.mxu0 %v2441_v31  ;;  %1778 = vmatmul.bf16.vlgmr.msrb.gmra.mxu1 %v3674_v46  ;;  %v2989_v31 = vld [vmem:[%s3473_s25 + $0xa4] sm:$0xf]  ;;  %v2401_v38 = vor.u32 %v2973_v29, %v2398_v30  ;;  %v2694_v6 = vld [vmem:[%s3473_s25 + $0x278] sm:$0xf0]  ;;  %v2686_v22 = vld [vmem:[%s3473_s25 + $0x268] sm:$0xf0] }
 0x150   : > { %1826 = vmatpush.bf16.msra.mxu1 %v2505_v35  ;;  %1792 = vmatmul.bf16.vlgmr.msrb.gmra.mxu2 %v3672_v45  ;;  %v2526_v35 = vld [vmem:[%s3473_s25 + $0x128] sm:$0xf0]  ;;  %v2465_v39 = vor.u32 %v2989_v31, %v2462_v33  ;;  %v2758_v9 = vld [vmem:[%s3473_s25 + $0x2f8] sm:$0xf0]  ;;  %v2697_v17 = vor.u32 %v3047_v5, %v2694_v6  ;;  %v3045_v21 = vld [vmem:[%s3473_s25 + $0x264] sm:$0xf] }
 0x151   : > { %1840 = vmatpush.bf16.msra.mxu2 %v2569_v36  ;;  %1806 = vmatmul.bf16.vlgmr.msrb.gmra.mxu3 %v3678_v49  ;;  %v3021_v36 = vld [vmem:[%s3473_s25 + $0x1a4] sm:$0xf]  ;;  %v2822_v11 = vld [vmem:[%s3473_s25 + $0x378] sm:$0xf0]  ;;  %v2750_v25 = vld [vmem:[%s3473_s25 + $0x2e8] sm:$0xf0]  ;;  %v2689_v30 = vor.u32 %v3045_v21, %v2686_v22 }
 0x152   : > { %1854 = vmatpush.bf16.msra.mxu3 %v2633_v40  ;;  %v2529_v40 = vor.u32 %v3005_v34, %v2526_v35  ;;  %v2593_v47 = vor.u32 %v3021_v36, %v2590_v37  ;;  %v3061_v23 = vld [vmem:[%s3473_s25 + $0x2e4] sm:$0xf]  ;;  %v2878_v29 = vld [vmem:[%s3473_s25 + $0x3e8] sm:$0xf0]  ;;  %v3043_v33 = vld [vmem:[%s3473_s25 + $0x254] sm:$0xf] }
 0x153   : > { %1813 = vmatpush.bf16.msra.mxu0 %v2433_v51  ;;  %v3003_v51 = vld [vmem:[%s3473_s25 + $0x114] sm:$0xf]  ;;  %v2753_v31 = vor.u32 %v3061_v23, %v2750_v25  ;;  %v2678_v34 = vld [vmem:[%s3473_s25 + $0x258] sm:$0xf0]  ;;  %v2670_v48 = vld [vmem:[%s3473_s25 + $0x248] sm:$0xf0] }
 0x154   : > { %1827 = vmatpush.bf16.msra.mxu1 %v2497_v52  ;;  %v2518_v52 = vld [vmem:[%s3473_s25 + $0x118] sm:$0xf0]  ;;  %v3059_v35 = vld [vmem:[%s3473_s25 + $0x2d4] sm:$0xf]  ;;  %v2681_v43 = vor.u32 %v3043_v33, %v2678_v34  ;;  %v3033_v33 = vld [vmem:[%s3473_s25 + $0x204] sm:$0xf] }
 0x155   : > { %1841 = vmatpush.bf16.msra.mxu2 %v2561_v53  ;;  %v3019_v53 = vld [vmem:[%s3473_s25 + $0x194] sm:$0xf]  ;;  %v2521_v59 = vor.u32 %v3003_v51, %v2518_v52  ;;  %v2742_v37 = vld [vmem:[%s3473_s25 + $0x2d8] sm:$0xf0]  ;;  %v3057_v51 = vld [vmem:[%s3473_s25 + $0x2c4] sm:$0xf] }
 0x156   : > { %1855 = vmatpush.bf16.msra.mxu3 %v2625_v57  ;;  %v2382_v57 = vld [vmem:[%s3473_s25 + $0x8] sm:$0xf0]  ;;  %v2870_v42 = vld [vmem:[%s3473_s25 + $0x3d8] sm:$0xf0]  ;;  %v3055_v60 = vld [vmem:[%s3473_s25 + $0x2b4] sm:$0xf] }
 0x157   : > { %1814 = vmatpush.bf16.msra.mxu0 %v2425_v0  ;;  %v2585_v0 = vor.u32 %v3019_v53, %v2582_v54  ;;  %v2385_v8 = vor.u32 %v2969_v56, %v2382_v57  ;;  %v2734_v52 = vld [vmem:[%s3473_s25 + $0x2c8] sm:$0xf0]  ;;  %v3089_v54 = vld [vmem:[%s3473_s25 + $0x3c4] sm:$0xf]  ;;  %v3035_v21 = vld [vmem:[%s3473_s25 + $0x214] sm:$0xf] }
 0x158   : > { %1828 = vmatpush.bf16.msra.mxu1 %v2489_v1  ;;  %v2510_v1 = vld [vmem:[%s3473_s25 + $0x108] sm:$0xf0]  ;;  %v2737_v56 = vor.u32 %v3057_v51, %v2734_v52  ;;  %v2646_v22 = vld [vmem:[%s3473_s25 + $0x218] sm:$0xf0]  ;;  %v3051_v23 = vld [vmem:[%s3473_s25 + $0x294] sm:$0xf] }
 0x159   : > { %1842 = vmatpush.bf16.msra.mxu2 %v2553_v2  ;;  %v3017_v2 = vld [vmem:[%s3473_s25 + $0x184] sm:$0xf]  ;;  %v2798_v53 = vld [vmem:[%s3473_s25 + $0x348] sm:$0xf0]  ;;  %v2710_v25 = vld [vmem:[%s3473_s25 + $0x298] sm:$0xf0] }
 0x15a   : > { %1856 = vmatpush.bf16.msra.mxu3 %v2617_v7  ;;  %v3063_v7 = vld [vmem:[%s3473_s25 + $0x2f4] sm:$0xf]  ;;  %v2577_v16 = vor.u32 %v3017_v2, %v2574_v3  ;;  %v2854_v3 = vld [vmem:[%s3473_s25 + $0x3b8] sm:$0xf0]  ;;  %v2638_v34 = vld [vmem:[%s3473_s25 + $0x208] sm:$0xf0] }
 0x15b   : > { %1815 = vmatpush.bf16.msra.mxu0 %v2417_v13  ;;  %v2513_v13 = vor.u32 %v3001_v63, %v2510_v1  ;;  %v2761_v18 = vor.u32 %v3063_v7, %v2758_v9  ;;  %v2726_v63 = vld [vmem:[%s3473_s25 + $0x2b8] sm:$0xf0]  ;;  %v3087_v2 = vld [vmem:[%s3473_s25 + $0x3b4] sm:$0xf]  ;;  %v2654_v9 = vld [vmem:[%s3473_s25 + $0x228] sm:$0xf0] }
 0x15c   : > { %1829 = vmatpush.bf16.msra.mxu1 %v2481_v14  ;;  %v3095_v14 = vld [vmem:[%s3473_s25 + $0x3f4] sm:$0xf]  ;;  %v2790_v1 = vld [vmem:[%s3473_s25 + $0x338] sm:$0xf0]  ;;  %v2729_v6 = vor.u32 %v3055_v60, %v2726_v63  ;;  %s3097_s27 = sshll.u32 %s3317_s21, 3  ;;  %s1933_s21 = scalar_lea.sflag [#allocation5], %s3469_s14 }
 0x15d   : > { %1843 = vmatpush.bf16.msra.mxu2 %v2545_v15  ;;  %v2886_v15 = vld [vmem:[%s3473_s25 + $0x3f8] sm:$0xf0]  ;;  %s1947_s24 = scalar_lea.hbm %s3855_s5, %s3097_s27  ;;  %s3259_s28 = scalar_lea.hbm %s3855_s5, 32 }
 0x15e   : > { %1857 = vmatpush.bf16.msra.mxu3 %v2609_v20  ;;  %v2825_v20 = vor.u32 %v3079_v10, %v2822_v11  ;;  %v2889_v24 = vor.u32 %v3095_v14, %v2886_v15  ;;  %v3053_v10 = vld [vmem:[%s3473_s25 + $0x2a4] sm:$0xf]  ;;  %v2857_v11 = vor.u32 %v3087_v2, %v2854_v3  ;;  %v2782_v14 = vld [vmem:[%s3473_s25 + $0x328] sm:$0xf0]  ;;  %s1950_s1 = sshll.u32 %s1947_s24, 4  ;;  %s1951_s1 = int_to_ptr.hbm [resolvable:$true] %s1950_s1 }
 0x15f   : > { %1816 = vmatpush.bf16.msra.mxu0 %v2409_v26  ;;  %v3077_v26 = vld [vmem:[%s3473_s25 + $0x364] sm:$0xf]  ;;  %s3253_s23 = sshra.s32 %s1951_s1, 4  ;;  %s3254_s23 = int_to_ptr.hbm [resolvable:$true] %s3253_s23 }
 0x160   : > { %1830 = vmatpush.bf16.msra.mxu1 %v2473_v27  ;;  %v2814_v27 = vld [vmem:[%s3473_s25 + $0x368] sm:$0xf0]  ;;  %v3085_v15 = vld [vmem:[%s3473_s25 + $0x3a4] sm:$0xf]  ;;  %s3255_s26 = scalar_lea.hbm %s3254_s23, 16  ;;  %p3260_p13 = scmp.lt.s32.totalorder %s3254_s23, %s3855_s5 }
 0x161   : > { %1844 = vmatpush.bf16.msra.mxu2 %v2537_v28  ;;  %v3093_v28 = vld [vmem:[%s3473_s25 + $0x3e4] sm:$0xf]  ;;  %p3256_p4 = scmp.ne.s32.totalorder %s3254_s23, %s3255_s26  ;;  %p3261_p0 = scmp.lt.s32.totalorder %s3259_s28, %s3255_s26 }
 0x162   : > { %1858 = vmatpush.bf16.msra.mxu3 %v2601_v32  ;;  %v2817_v32 = vor.u32 %v3077_v26, %v2814_v27  ;;  %v2881_v36 = vor.u32 %v3093_v28, %v2878_v29  ;;  %v3067_v26 = vld [vmem:[%s3473_s25 + $0x314] sm:$0xf]  ;;  %v2774_v27 = vld [vmem:[%s3473_s25 + $0x318] sm:$0xf0] }
 0x163   : > { %1817 = vmatpush.bf16.msra.mxu0 %v2401_v38  ;;  %v3075_v38 = vld [vmem:[%s3473_s25 + $0x354] sm:$0xf]  ;;  %v2838_v29 = vld [vmem:[%s3473_s25 + $0x398] sm:$0xf0]  ;;  %p3257_p10 = pnand %p3256_p4, %p3445_p5  ;;  %p3262_p3 = por %p3261_p0, %p3260_p13 }
 0x164   : > { %1831 = vmatpush.bf16.msra.mxu1 %v2465_v39  ;;  %v2806_v39 = vld [vmem:[%s3473_s25 + $0x358] sm:$0xf0]  ;;  %v3083_v28 = vld [vmem:[%s3473_s25 + $0x394] sm:$0xf] }
 0x165   : > { %1845 = vmatpush.bf16.msra.mxu2 %v2529_v40  ;;  %v3091_v40 = vld [vmem:[%s3473_s25 + $0x3d4] sm:$0xf]  ;;  %v2809_v44 = vor.u32 %v3075_v38, %v2806_v39  ;;  %v3065_v38 = vld [vmem:[%s3473_s25 + $0x304] sm:$0xf]  ;;  %v2766_v39 = vld [vmem:[%s3473_s25 + $0x308] sm:$0xf0]  ;;  %p3258_p12 = pneg %p3257_p10 }
 0x166   : > { %1859 = vmatpush.bf16.msra.mxu3 %v2593_v47  ;;  %v3041_v47 = vld [vmem:[%s3473_s25 + $0x244] sm:$0xf] }
 0x167   : > { %1818 = vmatpush.bf16.msra.mxu0 %v2393_v55  ;;  %v2673_v55 = vor.u32 %v3041_v47, %v2670_v48  ;;  %p3263_p7 = pnand %p3262_p3, %p3258_p12 }
 0x168   : > { %1832 = vmatpush.bf16.msra.mxu1 %v2457_v58  ;;  %v3039_v58 = vld [vmem:[%s3473_s25 + $0x234] sm:$0xf] }
 0x169   : > { %1846 = vmatpush.bf16.msra.mxu2 %v2521_v59  ;;  %v2662_v59 = vld [vmem:[%s3473_s25 + $0x238] sm:$0xf0] }
 0x16a   : > { %1860 = vmatpush.bf16.msra.mxu3 %v2585_v0  ;;  %v3071_v0 = vld [vmem:[%s3473_s25 + $0x334] sm:$0xf]  ;;  %v2665_v5 = vor.u32 %v3039_v58, %v2662_v59 }
 0x16b   : > { %1819 = vmatpush.bf16.msra.mxu0 %v2385_v8  ;;  %v2793_v7 = vor.u32 %v3071_v0, %v2790_v1  ;;  %v3037_v8 = vld [vmem:[%s3473_s25 + $0x224] sm:$0xf] }
 0x16c   : > { %1833 = vmatpush.bf16.msra.mxu1 %v2449_v12  ;;  %v2718_v12 = vld [vmem:[%s3473_s25 + $0x2a8] sm:$0xf0] }
 0x16d   : > { %1847 = vmatpush.bf16.msra.mxu2 %v2513_v13  ;;  %v3069_v13 = vld [vmem:[%s3473_s25 + $0x324] sm:$0xf] }
 0x16e   : > { %1861 = vmatpush.bf16.msra.mxu3 %v2577_v16  ;;  %1820 = vmatmul.bf16.vlgmr.msra.gmra.mxu0 %v3598_v61  ;;  %v2873_v61 = vor.u32 %v3091_v40, %v2870_v42  ;;  %v2846_v16 = vld [vmem:[%s3473_s25 + $0x3a8] sm:$0xf0]  ;;  %v3081_v40 = vld [vmem:[%s3473_s25 + $0x384] sm:$0xf] }
 0x16f   : > { %1868 = vmatpush.bf16.msrb.mxu0 %v2697_v17  ;;  %1834 = vmatmul.bf16.vlgmr.msra.gmra.mxu1 %v3610_v50  ;;  %v2862_v50 = vld [vmem:[%s3473_s25 + $0x3c8] sm:$0xf0]  ;;  %v2657_v17 = vor.u32 %v3037_v8, %v2654_v9 }
 0x170   : > { %1882 = vmatpush.bf16.msrb.mxu1 %v2761_v18  ;;  %1848 = vmatmul.bf16.vlgmr.msra.gmra.mxu2 %v3603_v4  ;;  %v2745_v4 = vor.u32 %v3059_v35, %v2742_v37  ;;  %v2865_v62 = vor.u32 %v3089_v54, %v2862_v50  ;;  %v2721_v18 = vor.u32 %v3053_v10, %v2718_v12  ;;  %v3049_v35 = vld [vmem:[%s3473_s25 + $0x284] sm:$0xf]  ;;  %v2702_v37 = vld [vmem:[%s3473_s25 + $0x288] sm:$0xf0] }
 0x171   : > { %1896 = vmatpush.bf16.msrb.mxu2 %v2825_v20  ;;  %1862 = vmatmul.bf16.vlgmr.msra.gmra.mxu3 %v3615_v19  ;;  %v3073_v19 = vld [vmem:[%s3473_s25 + $0x344] sm:$0xf]  ;;  %v2785_v20 = vor.u32 %v3069_v13, %v2782_v14  ;;  %v2830_v42 = vld [vmem:[%s3473_s25 + $0x388] sm:$0xf0]  ;;  %s1948_s25 = sshll.u32 %s3487_s6, 4  ;;  %s1949_s25 = int_to_ptr.vmem [resolvable:$true] %s1948_s25 }
 0x172   : > { %1910 = vmatpush.bf16.msrb.mxu3 %v2889_v24  ;;  %v2801_v57 = vor.u32 %v3073_v19, %v2798_v53  ;;  %v2849_v24 = vor.u32 %v3085_v15, %v2846_v16  ;;  %v2833_v47 = vor.u32 %v3081_v40, %v2830_v42 }
 0x173   : > { %1869 = vmatpush.bf16.msrb.mxu0 %v2689_v30  ;;  %v2649_v30 = vor.u32 %v3035_v21, %v2646_v22 }
 0x174   : > { %1883 = vmatpush.bf16.msrb.mxu1 %v2753_v31  ;;  %v2713_v31 = vor.u32 %v3051_v23, %v2710_v25 }
 0x175   : > { %1897 = vmatpush.bf16.msrb.mxu2 %v2817_v32  ;;  %v2777_v32 = vor.u32 %v3067_v26, %v2774_v27 }
 0x176   : > { %1911 = vmatpush.bf16.msrb.mxu3 %v2881_v36  ;;  %v2841_v36 = vor.u32 %v3083_v28, %v2838_v29 }
 0x177   : > { %1870 = vmatpush.bf16.msrb.mxu0 %v2681_v43  ;;  %v2641_v43 = vor.u32 %v3033_v33, %v2638_v34 }
 0x178   : > { %1884 = vmatpush.bf16.msrb.mxu1 %v2745_v4  ;;  %v2705_v4 = vor.u32 %v3049_v35, %v2702_v37 }
 0x179   : > { %1898 = vmatpush.bf16.msrb.mxu2 %v2809_v44  ;;  %v2769_v44 = vor.u32 %v3065_v38, %v2766_v39 }
 0x17a   : > { %1912 = vmatpush.bf16.msrb.mxu3 %v2873_v61 }
 0x17b   : > { %1871 = vmatpush.bf16.msrb.mxu0 %v2673_v55 }
 0x17c   : > { %1885 = vmatpush.bf16.msrb.mxu1 %v2737_v56 }
 0x17d   : > { %1899 = vmatpush.bf16.msrb.mxu2 %v2801_v57 }
 0x17e   : > { %1913 = vmatpush.bf16.msrb.mxu3 %v2865_v62 }
 0x17f   : > { %1872 = vmatpush.bf16.msrb.mxu0 %v2665_v5 }
 0x180   : > { %1886 = vmatpush.bf16.msrb.mxu1 %v2729_v6 }
 0x181   : > { %1900 = vmatpush.bf16.msrb.mxu2 %v2793_v7 }
 0x182   : > { %1914 = vmatpush.bf16.msrb.mxu3 %v2857_v11 }
 0x183   : > { %1873 = vmatpush.bf16.msrb.mxu0 %v2657_v17 }
 0x184   : > { %1887 = vmatpush.bf16.msrb.mxu1 %v2721_v18 }
 0x185   : > { %1901 = vmatpush.bf16.msrb.mxu2 %v2785_v20 }
 0x186   : > { %1915 = vmatpush.bf16.msrb.mxu3 %v2849_v24 }
 0x187   : > { %1874 = vmatpush.bf16.msrb.mxu0 %v2649_v30 }
 0x188   : > { %1888 = vmatpush.bf16.msrb.mxu1 %v2713_v31 }
 0x189   : > { %1902 = vmatpush.bf16.msrb.mxu2 %v2777_v32 }
 0x18a   : > { %1916 = vmatpush.bf16.msrb.mxu3 %v2841_v36 }
 0x18b   : > { %1875 = vmatpush.bf16.msrb.mxu0 %v2641_v43 }
 0x18c   : > { %1889 = vmatpush.bf16.msrb.mxu1 %v2705_v4 }
 0x18d   : > { %1903 = vmatpush.bf16.msrb.mxu2 %v2769_v44 }
 0x18e   : > { %1917 = vmatpush.bf16.msrb.mxu3 %v2833_v47  ;;  %1876 = vmatmul.bf16.vlgmr.msrb.gmra.mxu0 %v3667_v41  ;;  %v1014_v41 = vld [vmem:[%s316_s13] sm:$0x3] }
 0x18f   : > { %1890 = vmatmul.bf16.vlgmr.msrb.gmra.mxu1 %v3674_v46  ;;  %v1016_v46 = vperm.slane %v1014_v41, 0  ;;  %v1017_v1 = vperm.slane %v1014_v41, 1 }
 0x190   : > { %1904 = vmatmul.bf16.vlgmr.msrb.gmra.mxu2 %v3672_v45 }
 0x191   : > { %1918 = vmatmul.bf16.vlgmr.msrb.gmra.mxu3 %v3678_v49 }
 0x1ab   : > { %v1709_v48 = vpop.f32.mrf.mxu0 }
 0x1ac   : > { %v1723_v51 = vpop.f32.mrf.mxu1  ;;  %v1710_v59 = vadd.f32 %v1709_v48, %v1016_v46 }
 0x1ae   : > { %v1724_v0 = vadd.f32 %v1723_v51, %v1710_v59 }
 0x1b3   : > { %v1737_v61 = vpop.f32.mrf.mxu2  ;;  %v1711_v19 = vpop.f32.mrf.mxu0 }
 0x1b4   : > { %v1751_v52 = vpop.f32.mrf.mxu3  ;;  %v1725_v53 = vpop.f32.mrf.mxu1  ;;  %v1738_v3 = vadd.f32 %v1737_v61, %v1724_v0  ;;  %v1712_v7 = vadd.f32 %v1711_v19, %v1016_v46 }
 0x1b6   : > { %v1752_v9 = vadd.f32 %v1751_v52, %v1738_v3  ;;  %v1726_v12 = vadd.f32 %v1725_v53, %v1712_v7 }
 0x1bb   : > { %v1739_v54 = vpop.f32.mrf.mxu2 }
 0x1bc   : > { %v1753_v50 = vpop.f32.mrf.mxu3  ;;  %v1740_v17 = vadd.f32 %v1739_v54, %v1726_v12 }
 0x1be   : > { %v1754_v25 = vadd.f32 %v1753_v50, %v1740_v17 }
 0x1cb   : > { %v1765_v55 = vpop.f32.mrf.mxu0 }
 0x1cc   : > { %v1779_v56 = vpop.f32.mrf.mxu1  ;;  %v1766_v14 = vadd.f32 %v1765_v55, %v1752_v9 }
 0x1ce   : > { %v1780_v20 = vadd.f32 %v1779_v56, %v1766_v14 }
 0x1d3   : > { %v1793_v57 = vpop.f32.mrf.mxu2  ;;  %v1767_v45 = vpop.f32.mrf.mxu0 }
 0x1d4   : > { %v1807_v58 = vpop.f32.mrf.mxu3  ;;  %v1781_v49 = vpop.f32.mrf.mxu1  ;;  %v1794_v28 = vadd.f32 %v1793_v57, %v1780_v20  ;;  %v1768_v30 = vadd.f32 %v1767_v45, %v1754_v25 }
 0x1d6   : > { %v1808_v33 = vadd.f32 %v1807_v58, %v1794_v28  ;;  %v1782_v38 = vadd.f32 %v1781_v49, %v1768_v30 }
 0x1d8   : > { %v1924_v42 = vmax.f32 %v1808_v33, 0.0 }
 0x1db   : > { %v1795_v60 = vpop.f32.mrf.mxu2 }
 0x1dc   : > { %v1809_v62 = vpop.f32.mrf.mxu3  ;;  %v1796_v43 = vadd.f32 %v1795_v60, %v1782_v38 }
 0x1de   : > { %v1810_v61 = vadd.f32 %v1809_v62, %v1796_v43 }
 0x1e0   : > { %v1926_v54 = vmax.f32 %v1810_v61, 0.0 }
 0x1eb   : > { %v1821_v63 = vpop.f32.mrf.mxu0 }
 0x1ec   : > { %v1835_v2 = vpop.f32.mrf.mxu1  ;;  %v1822_v5 = vadd.f32 %v1821_v63, %v1017_v1 }
 0x1ee   : > { %v1836_v10 = vadd.f32 %v1835_v2, %v1822_v5 }
 0x1f3   : > { %v1849_v6 = vpop.f32.mrf.mxu2  ;;  %v1823_v11 = vpop.f32.mrf.mxu0 }
 0x1f4   : > { %v1863_v8 = vpop.f32.mrf.mxu3  ;;  %v1837_v13 = vpop.f32.mrf.mxu1  ;;  %v1850_v15 = vadd.f32 %v1849_v6, %v1836_v10  ;;  %v1824_v16 = vadd.f32 %v1823_v11, %v1017_v1 }
 0x1f6   : > { %v1864_v21 = vadd.f32 %v1863_v8, %v1850_v15  ;;  %v1838_v22 = vadd.f32 %v1837_v13, %v1824_v16 }
 0x1fb   : > { %v1851_v18 = vpop.f32.mrf.mxu2 }
 0x1fc   : > { %v1865_v23 = vpop.f32.mrf.mxu3  ;;  %v1852_v29 = vadd.f32 %v1851_v18, %v1838_v22 }
 0x1fe   : > { %v1866_v34 = vadd.f32 %v1865_v23, %v1852_v29 }
 0x20b   : > { %v1877_v24 = vpop.f32.mrf.mxu0 }
 0x20c   : > { %v1878_v26 = vadd.f32 %v1877_v24, %v1864_v21  ;;  %v1891_v27 = vpop.f32.mrf.mxu1 }
 0x20e   : > { %v1892_v31 = vadd.f32 %v1891_v27, %v1878_v26 }
 0x213   : > { %v1905_v32 = vpop.f32.mrf.mxu2  ;;  %v1879_v37 = vpop.f32.mrf.mxu0 }
 0x214   : > { %v1906_v35 = vadd.f32 %v1905_v32, %v1892_v31  ;;  %v1919_v36 = vpop.f32.mrf.mxu3  ;;  %v1880_v40 = vadd.f32 %v1879_v37, %v1866_v34  ;;  %v1893_v44 = vpop.f32.mrf.mxu1 }
 0x216   : > { %v1920_v39 = vadd.f32 %v1919_v36, %v1906_v35  ;;  %v1894_v48 = vadd.f32 %v1893_v44, %v1880_v40 }
 0x218   : > { %v1925_v4 = vmax.f32 %v1920_v39, 0.0 }
 0x21a   : > { %v1928_v47 = vpack.c.bf16 %v1925_v4, %v1924_v42 }
 0x21b   : > { %v1907_v51 = vpop.f32.mrf.mxu2 }
 0x21c   : > { %1930 = vst [vmem:[%s3487_s6] sm:$0xff] %v1928_v47  ;;  %v1908_v52 = vadd.f32 %v1907_v51, %v1894_v48  ;;  %v1921_v19 = vpop.f32.mrf.mxu3 }
 0x21e   : > { %v1922_v53 = vadd.f32 %v1921_v19, %v1908_v52 }
 0x220   : > { %v1927_v50 = vmax.f32 %v1922_v53, 0.0 }
 0x222   : > { %v1929_v55 = vpack.c.bf16 %v1927_v50, %v1926_v54 }
 0x224   : > { %1931 = vst [vmem:[%s3487_s6 + $0x8] sm:$0xff] %v1929_v55 }
 0x225   : > { %3266 = shalt.err (!%p3263_p7)
}
 0x226   : > { %s3333_s14 = smov 128   ;;  %s3334_s6 = smov 256  }
 0x227   : > { %s3335_s10 = smov 8  }
 0x228   : > { %3104 = dma.vmem_to_hbm [thread:$0]  (%p3445_p5), %s1949_s25, 256, %s1951_s1, %s1933_s21, %s3333_s14, %s3334_s6, %s3335_s10  }
 0x229 PF: > { %s3870_s11 = sld [smem:[#allocation12_spill]]  ;;  %s1965_s12 = sand.u32 1, %s3305_s18  }
 0x22a   : > { %p3115_p9 = pnand %p2076_p11, %p3415_p6  ;;  %s1966_s27 = scalar_lea.sflag [#allocation5], %s1965_s12 }
 0x22c   : > { %p3116_p2 = pneg %p3115_p9 }
 0x22e   : > { %3300 = dma.done.wait (%p3116_p2), %s1966_s27, 256  }
 0x22f   : > { %3302 = vsyncadd (%p3116_p2), %s1966_s27, 4294967040  ;;  %s22_s23 = sadd.s32 1, %s3870_s11   ;;  %s3871_s16 = sld [smem:[#allocation13_spill]] }
 0x230   : > { %p19_p1 = scmp.ge.s32.totalorder %s22_s23, 4   ;;  %s3872_s18 = smov %s3309_s19 }
 0x231   : > { %s3873_s19 = smov %s3313_s20  ;;  %s3874_s20 = smov %s3454_s30 }
 0x232   : > { %s3875_s21 = smov %s3321_s22  ;;  %21 = sbr.rel (!%p19_p1) target bundleno = 9 (0x9), region = 100 }
 0x235   : > { %s3876_s22 = smov %s3871_s16 }
 0x237   :  { %1972 = vsyncpa [#allocation4], 1 }
 0x238   :  { %1974 = vsyncpa [#allocation4 + $0x1], 1 }
 0x239   :  { %1975 = vsyncpa [#allocation7], 1 }
 0x23a   :  { %1977 = vsyncpa [#allocation7 + $0x1], 1 }
 0x23b   :  { %1978 = vsyncpa [#allocation5], 1 }
 0x23c   :  { %1980 = vsyncpa [#allocation5 + $0x1], 1 }

</bundles_post_ra>
